<compile_context>
chip_gen: v6e
topology: v6e:2x2x1
jax: 0.10.0
libtpu: 0.0.40
codegen_flags: <defaults>
</compile_context>

<pallas_src>
import jax
import jax.numpy as jnp
from jax import lax
from jax.experimental import pallas as pl
from jax.experimental.pallas import tpu as pltpu

HIDDEN = 128


def _sigmoid(x):
    # exp on the EUP + approximate reciprocal (vrcp, EUP slot) keeps the divide
    # off the VALU on the serial critical path.
    return pl.reciprocal(1.0 + jnp.exp(-x), approx=True)


def _make_lstm_kernel(T, Tc):
    """Builds the chunked-recurrence kernel for static (T, Tc)."""
    H = HIDDEN
    rem = T % Tc  # steps in the last T chunk (0 means the last chunk is full)

    def kernel(gx_ref, whh_ref, h_out_ref, h_scratch, c_scratch):
        # gx_ref   : (Tc, Bb, 4H) bf16   chunk of precomputed input gates
        # whh_ref  : (H, 4H)      bf16   recurrent weights (transposed, resident)
        # h_out_ref: (Bb, H)      f32    last hidden state (lane-dense)
        # h_scratch, c_scratch: (Bb, H) f32 carried state across T chunks
        t_chunk = pl.program_id(1)
        n_chunks = pl.num_programs(1)

        @pl.when(t_chunk == 0)
        def _():
            h_scratch[...] = jnp.zeros_like(h_scratch)
            c_scratch[...] = jnp.zeros_like(c_scratch)

        # Hoisted: the 128 KiB recurrent weight is loaded once per chunk, not
        # once per unrolled step.
        whh = whh_ref[...]

        def run_steps(n_steps):
            def step(i, carry):
                h_prev, c_prev = carry
                # Recurrent projection on the MXU (bf16 in, f32 accumulate);
                # input gates added in f32.
                gates = gx_ref[i].astype(jnp.float32) + jnp.dot(
                    h_prev.astype(jnp.bfloat16), whh,
                    preferred_element_type=jnp.float32)
                i_g = _sigmoid(gates[:, 0 * H:1 * H])
                f_g = _sigmoid(gates[:, 1 * H:2 * H])
                g_g = jnp.tanh(gates[:, 2 * H:3 * H])
                o_g = _sigmoid(gates[:, 3 * H:4 * H])
                c_new = f_g * c_prev + i_g * g_g
                h_new = o_g * jnp.tanh(c_new)
                return (h_new, c_new)

            h, c = lax.fori_loop(0, n_steps, step,
                                 (h_scratch[...], c_scratch[...]),
                                 unroll=True)
            h_scratch[...] = h
            c_scratch[...] = c

        if rem == 0:
            # Every chunk is full: no per-step masking needed anywhere.
            run_steps(Tc)
        else:
            # Only the last chunk is short; which steps are valid is static, so
            # branch once per chunk instead of masking every step.
            @pl.when(t_chunk < n_chunks - 1)
            def _():
                run_steps(Tc)

            @pl.when(t_chunk == n_chunks - 1)
            def _():
                run_steps(rem)

        @pl.when(t_chunk == n_chunks - 1)
        def _():
            h_out_ref[...] = h_scratch[...]

    return kernel


def lstm_net_forward(x, params, *, tc_max=16, bb_max=128):
    """x: (B, T, D) float32.  Returns (B, 1) float32."""
    B, T, D = x.shape
    H = HIDDEN

    # Batch: pad to a multiple of 16 (full bf16 sublane packing) and block it so
    # a leading "parallel" grid axis can be split across v7x's two TensorCores.
    Bb = min(bb_max, ((B + 15) // 16) * 16)
    Bp = ((B + Bb - 1) // Bb) * Bb
    n_b = Bp // Bb

    # Time: chunk so VMEM stays bounded independent of T.  Tc <= 16 keeps the
    # double-buffered bf16 chunk (2 * Tc * Bb * 4H * 2B <= 4 MiB at Bb=128) well
    # inside even v7x's 64 MiB / the 16-32 MiB scoped defaults, and small enough
    # to fully unroll the inner loop.
    Tc = min(tc_max, T)
    n_t = (T + Tc - 1) // Tc
    Tp = n_t * Tc

    # Hoisted input projection: one MXU-friendly (B*T, D) @ (D, 4H) matmul,
    # emitted directly in the (T, B, 4H) layout the recurrence consumes and cast
    # to bf16 for the HBM round trip.
    bias = (params["b_ih"] + params["b_hh"]).astype(jnp.float32)
    gates_x = jnp.einsum("btd,gd->tbg", x, params["w_ih"],
                         preferred_element_type=jnp.float32) + bias
    gates_x = gates_x.astype(jnp.bfloat16)
    # Padded T steps are never executed (last-chunk branch runs only `rem` steps);
    # padded batch rows are computed but sliced off before the final projection.
    gates_x = jnp.pad(gates_x, ((0, Tp - T), (0, Bp - B), (0, 0)))

    # bf16 recurrent weights for the MXU (f32 accumulation kept in the kernel).
    whh_t = params["w_hh"].T.astype(jnp.bfloat16)          # (H, 4H)

    kernel = _make_lstm_kernel(T, Tc)

    h_last = pl.pallas_call(
        kernel,
        out_shape=jax.ShapeDtypeStruct((Bp, H), jnp.float32),
        grid_spec=pltpu.PrefetchScalarGridSpec(
            num_scalar_prefetch=0,
            grid=(n_b, n_t),
            in_specs=[
                # gates_x chunk: streamed / double-buffered over the T grid.
                pl.BlockSpec((Tc, Bb, 4 * H), lambda b, t: (t, b, 0)),
                # W_hh^T: same block every step -> DMA'd once, stays resident.
                pl.BlockSpec((H, 4 * H), lambda b, t: (0, 0)),
            ],
            out_specs=pl.BlockSpec((Bb, H), lambda b, t: (b, 0)),
            scratch_shapes=[
                pltpu.VMEM((Bb, H), jnp.float32),   # h carry
                pltpu.VMEM((Bb, H), jnp.float32),   # c carry
            ],
        ),
        compiler_params=pltpu.CompilerParams(
            dimension_semantics=("parallel", "arbitrary"),
            vmem_limit_bytes=32 * 1024 * 1024,
        ),
    )(gates_x, whh_t)

    # Final Linear(128 -> 1) on the last timestep, done in the wrapper so the
    # kernel output stays lane-dense (no N=1 MXU matmul / masked stores).
    return h_last[:B] @ params["w_out"].T + params["b_out"]


def lstm_net_reference(x, params):
    """Plain-JAX f32 reference mirroring PyTorch nn.LSTM (gate order i,f,g,o)."""
    B, T, D = x.shape
    H = HIDDEN
    w_ih, w_hh = params["w_ih"], params["w_hh"]
    b = params["b_ih"] + params["b_hh"]

    def step(carry, x_t):
        h, c = carry
        gates = x_t @ w_ih.T + h @ w_hh.T + b
        i = jax.nn.sigmoid(gates[:, 0 * H:1 * H])
        f = jax.nn.sigmoid(gates[:, 1 * H:2 * H])
        g = jnp.tanh(gates[:, 2 * H:3 * H])
        o = jax.nn.sigmoid(gates[:, 3 * H:4 * H])
        c = f * c + i * g
        h = o * jnp.tanh(c)
        return (h, c), None

    h0 = jnp.zeros((B, H), jnp.float32)
    c0 = jnp.zeros((B, H), jnp.float32)
    (h_last, _), _ = lax.scan(step, (h0, c0), jnp.transpose(x, (1, 0, 2)))
    return h_last @ params["w_out"].T + params["b_out"]


def make_params(key, input_size):
    """Deterministic synthetic init (PyTorch-style U(-1/sqrt(H), 1/sqrt(H)))."""
    H = HIDDEN
    k = 1.0 / jnp.sqrt(jnp.float32(H))
    ks = jax.random.split(key, 6)
    u = lambda kk, shape: jax.random.uniform(kk, shape, jnp.float32, -k, k)
    return {
        "w_ih": u(ks[0], (4 * H, input_size)),
        "w_hh": u(ks[1], (4 * H, H)),
        "b_ih": u(ks[2], (4 * H,)),
        "b_hh": u(ks[3], (4 * H,)),
        "w_out": u(ks[4], (1, H)),
        "b_out": u(ks[5], (1,)),
    }


if __name__ == "__main__":
    key = jax.random.PRNGKey(0)
    kx1, kx2, kp = jax.random.split(key, 3)
    D = 16
    params = make_params(kp, D)

    fwd = jax.jit(lstm_net_forward)

    # Case 1: small shapes from the spec (single T chunk, single batch block).
    B1, T1 = 4, 8
    x1 = jax.random.normal(kx1, (B1, T1, D), jnp.float32)
    out1 = jax.block_until_ready(fwd(x1, params))
    ref1 = jax.block_until_ready(lstm_net_reference(x1, params))
    assert out1.shape == (B1, 1), out1.shape
    # bf16 gates / recurrent matmul (f32 accumulate) vs pure-f32 reference.
    assert jnp.allclose(out1, ref1, atol=2.5e-2, rtol=2.5e-2), (out1, ref1)

    # Case 2: exercises batch padding and the multi-chunk + short-last-chunk path.
    B2, T2 = 5, 20
    x2 = jax.random.normal(kx2, (B2, T2, D), jnp.float32)
    out2 = jax.block_until_ready(fwd(x2, params))
    ref2 = jax.block_until_ready(lstm_net_reference(x2, params))
    assert out2.shape == (B2, 1), out2.shape
    assert jnp.allclose(out2, ref2, atol=2.5e-2, rtol=2.5e-2), (out2, ref2)

    print("KERNEL_OK")
</pallas_src>

<mosaic_0001>
module attributes {stable_mosaic.version = 11 : i64} {
  func.func @kernel(%arg0: i32, %arg1: i32, %arg2: memref<8x16x512xbf16, #tpu.memory_space<vmem>>, %arg3: memref<128x512xbf16, #tpu.memory_space<vmem>>, %arg4: memref<16x128xf32, #tpu.memory_space<vmem>>, %arg5: memref<16x128xf32, #tpu.memory_space<vmem>>, %arg6: memref<16x128xf32, #tpu.memory_space<vmem>>) attributes {dimension_semantics = [#tpu.dimension_semantics<parallel>, #tpu.dimension_semantics<arbitrary>], iteration_bounds = array<i64: 1, 1>, scalar_prefetch = 0 : i64, scratch_operands = 2 : i64, tpu.core_type = #tpu.core_type<tc>, window_params = [{transform_indices = @transform_0, window_bounds = array<i64: 8, 16, 512>}, {pipeline_mode = #tpu.pipeline_mode<synchronous>, transform_indices = @transform_1, window_bounds = array<i64: 128, 512>}, {transform_indices = @transform_2, window_bounds = array<i64: 16, 128>}]} {
    %c0_i32 = arith.constant 0 : i32
    %0 = arith.cmpi eq, %arg1, %c0_i32 : i32
    %1 = arith.extui %0 : i1 to i32
    %c0_i32_0 = arith.constant 0 : i32
    %2 = arith.cmpi ne, %1, %c0_i32_0 : i32
    scf.if %2 {
      %cst_84 = arith.constant 0.000000e+00 : f32
      %291 = vector.broadcast %cst_84 : f32 to vector<16x128xf32>
      %c0_85 = arith.constant 0 : index
      %c0_86 = arith.constant 0 : index
      %292 = vector.load %arg5[%c0_85, %c0_86] : memref<16x128xf32, #tpu.memory_space<vmem>>, vector<16x128xf32>
      tpu.vector_store %arg5[%c0_85, %c0_86], %291 {strides = array<i32>} : memref<16x128xf32, #tpu.memory_space<vmem>>, vector<16x128xf32>,
      %cst_87 = arith.constant 0.000000e+00 : f32
      %293 = vector.broadcast %cst_87 : f32 to vector<16x128xf32>
      %c0_88 = arith.constant 0 : index
      %c0_89 = arith.constant 0 : index
      %294 = vector.load %arg6[%c0_88, %c0_89] : memref<16x128xf32, #tpu.memory_space<vmem>>, vector<16x128xf32>
      tpu.vector_store %arg6[%c0_88, %c0_89], %293 {strides = array<i32>} : memref<16x128xf32, #tpu.memory_space<vmem>>, vector<16x128xf32>,
    } else {
    }
    %c0 = arith.constant 0 : index
    %c0_1 = arith.constant 0 : index
    %3 = vector.load %arg3[%c0, %c0_1] : memref<128x512xbf16, #tpu.memory_space<vmem>>, vector<128x512xbf16>
    %c0_2 = arith.constant 0 : index
    %c0_3 = arith.constant 0 : index
    %4 = vector.load %arg5[%c0_2, %c0_3] : memref<16x128xf32, #tpu.memory_space<vmem>>, vector<16x128xf32>
    %c0_4 = arith.constant 0 : index
    %c0_5 = arith.constant 0 : index
    %5 = vector.load %arg6[%c0_4, %c0_5] : memref<16x128xf32, #tpu.memory_space<vmem>>, vector<16x128xf32>
    %c0_i32_6 = arith.constant 0 : i32
    %6 = arith.index_cast %c0_i32_6 : i32 to index
    %c0_7 = arith.constant 0 : index
    %c0_8 = arith.constant 0 : index
    %7 = vector.load %arg2[%6, %c0_7, %c0_8] : memref<8x16x512xbf16, #tpu.memory_space<vmem>>, vector<1x16x512xbf16>
    %8 = vector.shape_cast %7 : vector<1x16x512xbf16> to vector<16x512xbf16>
    %9 = arith.extf %8 : vector<16x512xbf16> to vector<16x512xf32>
    %10 = arith.truncf %4 : vector<16x128xf32> to vector<16x128xbf16>
    %cst = arith.constant dense<0.000000e+00> : vector<16x512xf32>
    %11 = tpu.matmul %10, %3, %cst {dimension_numbers = #tpu.dot_dimension_numbers<[1], [0], [0], [1], [0, 0, 1, 1], [], []>} : vector<16x128xbf16>, vector<128x512xbf16>, vector<16x512xf32> -> vector<16x512xf32>
    %12 = arith.addf %9, %11 : vector<16x512xf32>
    %13 = vector.extract_strided_slice %12 {offsets = [0, 0], sizes = [16, 128], strides = [1, 1]} : vector<16x512xf32> to vector<16x128xf32>
    %cst_9 = arith.constant 0.000000e+00 : f32
    %14 = vector.broadcast %cst_9 : f32 to vector<16x128xf32>
    %15 = arith.subf %14, %13 : vector<16x128xf32>
    %16 = math.exp %15 : vector<16x128xf32>
    %cst_10 = arith.constant 1.000000e+00 : f32
    %17 = vector.broadcast %cst_10 : f32 to vector<16x128xf32>
    %18 = arith.addf %17, %16 : vector<16x128xf32>
    %19 = tpu.reciprocal %18 {approx = true} : vector<16x128xf32> -> vector<16x128xf32>
    %20 = vector.extract_strided_slice %12 {offsets = [0, 128], sizes = [16, 128], strides = [1, 1]} : vector<16x512xf32> to vector<16x128xf32>
    %cst_11 = arith.constant 0.000000e+00 : f32
    %21 = vector.broadcast %cst_11 : f32 to vector<16x128xf32>
    %22 = arith.subf %21, %20 : vector<16x128xf32>
    %23 = math.exp %22 : vector<16x128xf32>
    %cst_12 = arith.constant 1.000000e+00 : f32
    %24 = vector.broadcast %cst_12 : f32 to vector<16x128xf32>
    %25 = arith.addf %24, %23 : vector<16x128xf32>
    %26 = tpu.reciprocal %25 {approx = true} : vector<16x128xf32> -> vector<16x128xf32>
    %27 = vector.extract_strided_slice %12 {offsets = [0, 256], sizes = [16, 128], strides = [1, 1]} : vector<16x512xf32> to vector<16x128xf32>
    %28 = math.tanh %27 : vector<16x128xf32>
    %29 = vector.extract_strided_slice %12 {offsets = [0, 384], sizes = [16, 128], strides = [1, 1]} : vector<16x512xf32> to vector<16x128xf32>
    %cst_13 = arith.constant 0.000000e+00 : f32
    %30 = vector.broadcast %cst_13 : f32 to vector<16x128xf32>
    %31 = arith.subf %30, %29 : vector<16x128xf32>
    %32 = math.exp %31 : vector<16x128xf32>
    %cst_14 = arith.constant 1.000000e+00 : f32
    %33 = vector.broadcast %cst_14 : f32 to vector<16x128xf32>
    %34 = arith.addf %33, %32 : vector<16x128xf32>
    %35 = tpu.reciprocal %34 {approx = true} : vector<16x128xf32> -> vector<16x128xf32>
    %36 = arith.mulf %26, %5 : vector<16x128xf32>
    %37 = arith.mulf %19, %28 : vector<16x128xf32>
    %38 = arith.addf %36, %37 : vector<16x128xf32>
    %39 = math.tanh %38 : vector<16x128xf32>
    %40 = arith.mulf %35, %39 : vector<16x128xf32>
    %c1_i32 = arith.constant 1 : i32
    %41 = arith.index_cast %c1_i32 : i32 to index
    %c0_15 = arith.constant 0 : index
    %c0_16 = arith.constant 0 : index
    %42 = vector.load %arg2[%41, %c0_15, %c0_16] : memref<8x16x512xbf16, #tpu.memory_space<vmem>>, vector<1x16x512xbf16>
    %43 = vector.shape_cast %42 : vector<1x16x512xbf16> to vector<16x512xbf16>
    %44 = arith.extf %43 : vector<16x512xbf16> to vector<16x512xf32>
    %45 = arith.truncf %40 : vector<16x128xf32> to vector<16x128xbf16>
    %cst_17 = arith.constant dense<0.000000e+00> : vector<16x512xf32>
    %46 = tpu.matmul %45, %3, %cst_17 {dimension_numbers = #tpu.dot_dimension_numbers<[1], [0], [0], [1], [0, 0, 1, 1], [], []>} : vector<16x128xbf16>, vector<128x512xbf16>, vector<16x512xf32> -> vector<16x512xf32>
    %47 = arith.addf %44, %46 : vector<16x512xf32>
    %48 = vector.extract_strided_slice %47 {offsets = [0, 0], sizes = [16, 128], strides = [1, 1]} : vector<16x512xf32> to vector<16x128xf32>
    %cst_18 = arith.constant 0.000000e+00 : f32
    %49 = vector.broadcast %cst_18 : f32 to vector<16x128xf32>
    %50 = arith.subf %49, %48 : vector<16x128xf32>
    %51 = math.exp %50 : vector<16x128xf32>
    %cst_19 = arith.constant 1.000000e+00 : f32
    %52 = vector.broadcast %cst_19 : f32 to vector<16x128xf32>
    %53 = arith.addf %52, %51 : vector<16x128xf32>
    %54 = tpu.reciprocal %53 {approx = true} : vector<16x128xf32> -> vector<16x128xf32>
    %55 = vector.extract_strided_slice %47 {offsets = [0, 128], sizes = [16, 128], strides = [1, 1]} : vector<16x512xf32> to vector<16x128xf32>
    %cst_20 = arith.constant 0.000000e+00 : f32
    %56 = vector.broadcast %cst_20 : f32 to vector<16x128xf32>
    %57 = arith.subf %56, %55 : vector<16x128xf32>
    %58 = math.exp %57 : vector<16x128xf32>
    %cst_21 = arith.constant 1.000000e+00 : f32
    %59 = vector.broadcast %cst_21 : f32 to vector<16x128xf32>
    %60 = arith.addf %59, %58 : vector<16x128xf32>
    %61 = tpu.reciprocal %60 {approx = true} : vector<16x128xf32> -> vector<16x128xf32>
    %62 = vector.extract_strided_slice %47 {offsets = [0, 256], sizes = [16, 128], strides = [1, 1]} : vector<16x512xf32> to vector<16x128xf32>
    %63 = math.tanh %62 : vector<16x128xf32>
    %64 = vector.extract_strided_slice %47 {offsets = [0, 384], sizes = [16, 128], strides = [1, 1]} : vector<16x512xf32> to vector<16x128xf32>
    %cst_22 = arith.constant 0.000000e+00 : f32
    %65 = vector.broadcast %cst_22 : f32 to vector<16x128xf32>
    %66 = arith.subf %65, %64 : vector<16x128xf32>
    %67 = math.exp %66 : vector<16x128xf32>
    %cst_23 = arith.constant 1.000000e+00 : f32
    %68 = vector.broadcast %cst_23 : f32 to vector<16x128xf32>
    %69 = arith.addf %68, %67 : vector<16x128xf32>
    %70 = tpu.reciprocal %69 {approx = true} : vector<16x128xf32> -> vector<16x128xf32>
    %71 = arith.mulf %61, %38 : vector<16x128xf32>
    %72 = arith.mulf %54, %63 : vector<16x128xf32>
    %73 = arith.addf %71, %72 : vector<16x128xf32>
    %74 = math.tanh %73 : vector<16x128xf32>
    %75 = arith.mulf %70, %74 : vector<16x128xf32>
    %c2_i32 = arith.constant 2 : i32
    %76 = arith.index_cast %c2_i32 : i32 to index
    %c0_24 = arith.constant 0 : index
    %c0_25 = arith.constant 0 : index
    %77 = vector.load %arg2[%76, %c0_24, %c0_25] : memref<8x16x512xbf16, #tpu.memory_space<vmem>>, vector<1x16x512xbf16>
    %78 = vector.shape_cast %77 : vector<1x16x512xbf16> to vector<16x512xbf16>
    %79 = arith.extf %78 : vector<16x512xbf16> to vector<16x512xf32>
    %80 = arith.truncf %75 : vector<16x128xf32> to vector<16x128xbf16>
    %cst_26 = arith.constant dense<0.000000e+00> : vector<16x512xf32>
    %81 = tpu.matmul %80, %3, %cst_26 {dimension_numbers = #tpu.dot_dimension_numbers<[1], [0], [0], [1], [0, 0, 1, 1], [], []>} : vector<16x128xbf16>, vector<128x512xbf16>, vector<16x512xf32> -> vector<16x512xf32>
    %82 = arith.addf %79, %81 : vector<16x512xf32>
    %83 = vector.extract_strided_slice %82 {offsets = [0, 0], sizes = [16, 128], strides = [1, 1]} : vector<16x512xf32> to vector<16x128xf32>
    %cst_27 = arith.constant 0.000000e+00 : f32
    %84 = vector.broadcast %cst_27 : f32 to vector<16x128xf32>
    %85 = arith.subf %84, %83 : vector<16x128xf32>
    %86 = math.exp %85 : vector<16x128xf32>
    %cst_28 = arith.constant 1.000000e+00 : f32
    %87 = vector.broadcast %cst_28 : f32 to vector<16x128xf32>
    %88 = arith.addf %87, %86 : vector<16x128xf32>
    %89 = tpu.reciprocal %88 {approx = true} : vector<16x128xf32> -> vector<16x128xf32>
    %90 = vector.extract_strided_slice %82 {offsets = [0, 128], sizes = [16, 128], strides = [1, 1]} : vector<16x512xf32> to vector<16x128xf32>
    %cst_29 = arith.constant 0.000000e+00 : f32
    %91 = vector.broadcast %cst_29 : f32 to vector<16x128xf32>
    %92 = arith.subf %91, %90 : vector<16x128xf32>
    %93 = math.exp %92 : vector<16x128xf32>
    %cst_30 = arith.constant 1.000000e+00 : f32
    %94 = vector.broadcast %cst_30 : f32 to vector<16x128xf32>
    %95 = arith.addf %94, %93 : vector<16x128xf32>
    %96 = tpu.reciprocal %95 {approx = true} : vector<16x128xf32> -> vector<16x128xf32>
    %97 = vector.extract_strided_slice %82 {offsets = [0, 256], sizes = [16, 128], strides = [1, 1]} : vector<16x512xf32> to vector<16x128xf32>
    %98 = math.tanh %97 : vector<16x128xf32>
    %99 = vector.extract_strided_slice %82 {offsets = [0, 384], sizes = [16, 128], strides = [1, 1]} : vector<16x512xf32> to vector<16x128xf32>
    %cst_31 = arith.constant 0.000000e+00 : f32
    %100 = vector.broadcast %cst_31 : f32 to vector<16x128xf32>
    %101 = arith.subf %100, %99 : vector<16x128xf32>
    %102 = math.exp %101 : vector<16x128xf32>
    %cst_32 = arith.constant 1.000000e+00 : f32
    %103 = vector.broadcast %cst_32 : f32 to vector<16x128xf32>
    %104 = arith.addf %103, %102 : vector<16x128xf32>
    %105 = tpu.reciprocal %104 {approx = true} : vector<16x128xf32> -> vector<16x128xf32>
    %106 = arith.mulf %96, %73 : vector<16x128xf32>
    %107 = arith.mulf %89, %98 : vector<16x128xf32>
    %108 = arith.addf %106, %107 : vector<16x128xf32>
    %109 = math.tanh %108 : vector<16x128xf32>
    %110 = arith.mulf %105, %109 : vector<16x128xf32>
    %c3_i32 = arith.constant 3 : i32
    %111 = arith.index_cast %c3_i32 : i32 to index
    %c0_33 = arith.constant 0 : index
    %c0_34 = arith.constant 0 : index
    %112 = vector.load %arg2[%111, %c0_33, %c0_34] : memref<8x16x512xbf16, #tpu.memory_space<vmem>>, vector<1x16x512xbf16>
    %113 = vector.shape_cast %112 : vector<1x16x512xbf16> to vector<16x512xbf16>
    %114 = arith.extf %113 : vector<16x512xbf16> to vector<16x512xf32>
    %115 = arith.truncf %110 : vector<16x128xf32> to vector<16x128xbf16>
    %cst_35 = arith.constant dense<0.000000e+00> : vector<16x512xf32>
    %116 = tpu.matmul %115, %3, %cst_35 {dimension_numbers = #tpu.dot_dimension_numbers<[1], [0], [0], [1], [0, 0, 1, 1], [], []>} : vector<16x128xbf16>, vector<128x512xbf16>, vector<16x512xf32> -> vector<16x512xf32>
    %117 = arith.addf %114, %116 : vector<16x512xf32>
    %118 = vector.extract_strided_slice %117 {offsets = [0, 0], sizes = [16, 128], strides = [1, 1]} : vector<16x512xf32> to vector<16x128xf32>
    %cst_36 = arith.constant 0.000000e+00 : f32
    %119 = vector.broadcast %cst_36 : f32 to vector<16x128xf32>
    %120 = arith.subf %119, %118 : vector<16x128xf32>
    %121 = math.exp %120 : vector<16x128xf32>
    %cst_37 = arith.constant 1.000000e+00 : f32
    %122 = vector.broadcast %cst_37 : f32 to vector<16x128xf32>
    %123 = arith.addf %122, %121 : vector<16x128xf32>
    %124 = tpu.reciprocal %123 {approx = true} : vector<16x128xf32> -> vector<16x128xf32>
    %125 = vector.extract_strided_slice %117 {offsets = [0, 128], sizes = [16, 128], strides = [1, 1]} : vector<16x512xf32> to vector<16x128xf32>
    %cst_38 = arith.constant 0.000000e+00 : f32
    %126 = vector.broadcast %cst_38 : f32 to vector<16x128xf32>
    %127 = arith.subf %126, %125 : vector<16x128xf32>
    %128 = math.exp %127 : vector<16x128xf32>
    %cst_39 = arith.constant 1.000000e+00 : f32
    %129 = vector.broadcast %cst_39 : f32 to vector<16x128xf32>
    %130 = arith.addf %129, %128 : vector<16x128xf32>
    %131 = tpu.reciprocal %130 {approx = true} : vector<16x128xf32> -> vector<16x128xf32>
    %132 = vector.extract_strided_slice %117 {offsets = [0, 256], sizes = [16, 128], strides = [1, 1]} : vector<16x512xf32> to vector<16x128xf32>
    %133 = math.tanh %132 : vector<16x128xf32>
    %134 = vector.extract_strided_slice %117 {offsets = [0, 384], sizes = [16, 128], strides = [1, 1]} : vector<16x512xf32> to vector<16x128xf32>
    %cst_40 = arith.constant 0.000000e+00 : f32
    %135 = vector.broadcast %cst_40 : f32 to vector<16x128xf32>
    %136 = arith.subf %135, %134 : vector<16x128xf32>
    %137 = math.exp %136 : vector<16x128xf32>
    %cst_41 = arith.constant 1.000000e+00 : f32
    %138 = vector.broadcast %cst_41 : f32 to vector<16x128xf32>
    %139 = arith.addf %138, %137 : vector<16x128xf32>
    %140 = tpu.reciprocal %139 {approx = true} : vector<16x128xf32> -> vector<16x128xf32>
    %141 = arith.mulf %131, %108 : vector<16x128xf32>
    %142 = arith.mulf %124, %133 : vector<16x128xf32>
    %143 = arith.addf %141, %142 : vector<16x128xf32>
    %144 = math.tanh %143 : vector<16x128xf32>
    %145 = arith.mulf %140, %144 : vector<16x128xf32>
    %c4_i32 = arith.constant 4 : i32
    %146 = arith.index_cast %c4_i32 : i32 to index
    %c0_42 = arith.constant 0 : index
    %c0_43 = arith.constant 0 : index
    %147 = vector.load %arg2[%146, %c0_42, %c0_43] : memref<8x16x512xbf16, #tpu.memory_space<vmem>>, vector<1x16x512xbf16>
    %148 = vector.shape_cast %147 : vector<1x16x512xbf16> to vector<16x512xbf16>
    %149 = arith.extf %148 : vector<16x512xbf16> to vector<16x512xf32>
    %150 = arith.truncf %145 : vector<16x128xf32> to vector<16x128xbf16>
    %cst_44 = arith.constant dense<0.000000e+00> : vector<16x512xf32>
    %151 = tpu.matmul %150, %3, %cst_44 {dimension_numbers = #tpu.dot_dimension_numbers<[1], [0], [0], [1], [0, 0, 1, 1], [], []>} : vector<16x128xbf16>, vector<128x512xbf16>, vector<16x512xf32> -> vector<16x512xf32>
    %152 = arith.addf %149, %151 : vector<16x512xf32>
    %153 = vector.extract_strided_slice %152 {offsets = [0, 0], sizes = [16, 128], strides = [1, 1]} : vector<16x512xf32> to vector<16x128xf32>
    %cst_45 = arith.constant 0.000000e+00 : f32
    %154 = vector.broadcast %cst_45 : f32 to vector<16x128xf32>
    %155 = arith.subf %154, %153 : vector<16x128xf32>
    %156 = math.exp %155 : vector<16x128xf32>
    %cst_46 = arith.constant 1.000000e+00 : f32
    %157 = vector.broadcast %cst_46 : f32 to vector<16x128xf32>
    %158 = arith.addf %157, %156 : vector<16x128xf32>
    %159 = tpu.reciprocal %158 {approx = true} : vector<16x128xf32> -> vector<16x128xf32>
    %160 = vector.extract_strided_slice %152 {offsets = [0, 128], sizes = [16, 128], strides = [1, 1]} : vector<16x512xf32> to vector<16x128xf32>
    %cst_47 = arith.constant 0.000000e+00 : f32
    %161 = vector.broadcast %cst_47 : f32 to vector<16x128xf32>
    %162 = arith.subf %161, %160 : vector<16x128xf32>
    %163 = math.exp %162 : vector<16x128xf32>
    %cst_48 = arith.constant 1.000000e+00 : f32
    %164 = vector.broadcast %cst_48 : f32 to vector<16x128xf32>
    %165 = arith.addf %164, %163 : vector<16x128xf32>
    %166 = tpu.reciprocal %165 {approx = true} : vector<16x128xf32> -> vector<16x128xf32>
    %167 = vector.extract_strided_slice %152 {offsets = [0, 256], sizes = [16, 128], strides = [1, 1]} : vector<16x512xf32> to vector<16x128xf32>
    %168 = math.tanh %167 : vector<16x128xf32>
    %169 = vector.extract_strided_slice %152 {offsets = [0, 384], sizes = [16, 128], strides = [1, 1]} : vector<16x512xf32> to vector<16x128xf32>
    %cst_49 = arith.constant 0.000000e+00 : f32
    %170 = vector.broadcast %cst_49 : f32 to vector<16x128xf32>
    %171 = arith.subf %170, %169 : vector<16x128xf32>
    %172 = math.exp %171 : vector<16x128xf32>
    %cst_50 = arith.constant 1.000000e+00 : f32
    %173 = vector.broadcast %cst_50 : f32 to vector<16x128xf32>
    %174 = arith.addf %173, %172 : vector<16x128xf32>
    %175 = tpu.reciprocal %174 {approx = true} : vector<16x128xf32> -> vector<16x128xf32>
    %176 = arith.mulf %166, %143 : vector<16x128xf32>
    %177 = arith.mulf %159, %168 : vector<16x128xf32>
    %178 = arith.addf %176, %177 : vector<16x128xf32>
    %179 = math.tanh %178 : vector<16x128xf32>
    %180 = arith.mulf %175, %179 : vector<16x128xf32>
    %c5_i32 = arith.constant 5 : i32
    %181 = arith.index_cast %c5_i32 : i32 to index
    %c0_51 = arith.constant 0 : index
    %c0_52 = arith.constant 0 : index
    %182 = vector.load %arg2[%181, %c0_51, %c0_52] : memref<8x16x512xbf16, #tpu.memory_space<vmem>>, vector<1x16x512xbf16>
    %183 = vector.shape_cast %182 : vector<1x16x512xbf16> to vector<16x512xbf16>
    %184 = arith.extf %183 : vector<16x512xbf16> to vector<16x512xf32>
    %185 = arith.truncf %180 : vector<16x128xf32> to vector<16x128xbf16>
    %cst_53 = arith.constant dense<0.000000e+00> : vector<16x512xf32>
    %186 = tpu.matmul %185, %3, %cst_53 {dimension_numbers = #tpu.dot_dimension_numbers<[1], [0], [0], [1], [0, 0, 1, 1], [], []>} : vector<16x128xbf16>, vector<128x512xbf16>, vector<16x512xf32> -> vector<16x512xf32>
    %187 = arith.addf %184, %186 : vector<16x512xf32>
    %188 = vector.extract_strided_slice %187 {offsets = [0, 0], sizes = [16, 128], strides = [1, 1]} : vector<16x512xf32> to vector<16x128xf32>
    %cst_54 = arith.constant 0.000000e+00 : f32
    %189 = vector.broadcast %cst_54 : f32 to vector<16x128xf32>
    %190 = arith.subf %189, %188 : vector<16x128xf32>
    %191 = math.exp %190 : vector<16x128xf32>
    %cst_55 = arith.constant 1.000000e+00 : f32
    %192 = vector.broadcast %cst_55 : f32 to vector<16x128xf32>
    %193 = arith.addf %192, %191 : vector<16x128xf32>
    %194 = tpu.reciprocal %193 {approx = true} : vector<16x128xf32> -> vector<16x128xf32>
    %195 = vector.extract_strided_slice %187 {offsets = [0, 128], sizes = [16, 128], strides = [1, 1]} : vector<16x512xf32> to vector<16x128xf32>
    %cst_56 = arith.constant 0.000000e+00 : f32
    %196 = vector.broadcast %cst_56 : f32 to vector<16x128xf32>
    %197 = arith.subf %196, %195 : vector<16x128xf32>
    %198 = math.exp %197 : vector<16x128xf32>
    %cst_57 = arith.constant 1.000000e+00 : f32
    %199 = vector.broadcast %cst_57 : f32 to vector<16x128xf32>
    %200 = arith.addf %199, %198 : vector<16x128xf32>
    %201 = tpu.reciprocal %200 {approx = true} : vector<16x128xf32> -> vector<16x128xf32>
    %202 = vector.extract_strided_slice %187 {offsets = [0, 256], sizes = [16, 128], strides = [1, 1]} : vector<16x512xf32> to vector<16x128xf32>
    %203 = math.tanh %202 : vector<16x128xf32>
    %204 = vector.extract_strided_slice %187 {offsets = [0, 384], sizes = [16, 128], strides = [1, 1]} : vector<16x512xf32> to vector<16x128xf32>
    %cst_58 = arith.constant 0.000000e+00 : f32
    %205 = vector.broadcast %cst_58 : f32 to vector<16x128xf32>
    %206 = arith.subf %205, %204 : vector<16x128xf32>
    %207 = math.exp %206 : vector<16x128xf32>
    %cst_59 = arith.constant 1.000000e+00 : f32
    %208 = vector.broadcast %cst_59 : f32 to vector<16x128xf32>
    %209 = arith.addf %208, %207 : vector<16x128xf32>
    %210 = tpu.reciprocal %209 {approx = true} : vector<16x128xf32> -> vector<16x128xf32>
    %211 = arith.mulf %201, %178 : vector<16x128xf32>
    %212 = arith.mulf %194, %203 : vector<16x128xf32>
    %213 = arith.addf %211, %212 : vector<16x128xf32>
    %214 = math.tanh %213 : vector<16x128xf32>
    %215 = arith.mulf %210, %214 : vector<16x128xf32>
    %c6_i32 = arith.constant 6 : i32
    %216 = arith.index_cast %c6_i32 : i32 to index
    %c0_60 = arith.constant 0 : index
    %c0_61 = arith.constant 0 : index
    %217 = vector.load %arg2[%216, %c0_60, %c0_61] : memref<8x16x512xbf16, #tpu.memory_space<vmem>>, vector<1x16x512xbf16>
    %218 = vector.shape_cast %217 : vector<1x16x512xbf16> to vector<16x512xbf16>
    %219 = arith.extf %218 : vector<16x512xbf16> to vector<16x512xf32>
    %220 = arith.truncf %215 : vector<16x128xf32> to vector<16x128xbf16>
    %cst_62 = arith.constant dense<0.000000e+00> : vector<16x512xf32>
    %221 = tpu.matmul %220, %3, %cst_62 {dimension_numbers = #tpu.dot_dimension_numbers<[1], [0], [0], [1], [0, 0, 1, 1], [], []>} : vector<16x128xbf16>, vector<128x512xbf16>, vector<16x512xf32> -> vector<16x512xf32>
    %222 = arith.addf %219, %221 : vector<16x512xf32>
    %223 = vector.extract_strided_slice %222 {offsets = [0, 0], sizes = [16, 128], strides = [1, 1]} : vector<16x512xf32> to vector<16x128xf32>
    %cst_63 = arith.constant 0.000000e+00 : f32
    %224 = vector.broadcast %cst_63 : f32 to vector<16x128xf32>
    %225 = arith.subf %224, %223 : vector<16x128xf32>
    %226 = math.exp %225 : vector<16x128xf32>
    %cst_64 = arith.constant 1.000000e+00 : f32
    %227 = vector.broadcast %cst_64 : f32 to vector<16x128xf32>
    %228 = arith.addf %227, %226 : vector<16x128xf32>
    %229 = tpu.reciprocal %228 {approx = true} : vector<16x128xf32> -> vector<16x128xf32>
    %230 = vector.extract_strided_slice %222 {offsets = [0, 128], sizes = [16, 128], strides = [1, 1]} : vector<16x512xf32> to vector<16x128xf32>
    %cst_65 = arith.constant 0.000000e+00 : f32
    %231 = vector.broadcast %cst_65 : f32 to vector<16x128xf32>
    %232 = arith.subf %231, %230 : vector<16x128xf32>
    %233 = math.exp %232 : vector<16x128xf32>
    %cst_66 = arith.constant 1.000000e+00 : f32
    %234 = vector.broadcast %cst_66 : f32 to vector<16x128xf32>
    %235 = arith.addf %234, %233 : vector<16x128xf32>
    %236 = tpu.reciprocal %235 {approx = true} : vector<16x128xf32> -> vector<16x128xf32>
    %237 = vector.extract_strided_slice %222 {offsets = [0, 256], sizes = [16, 128], strides = [1, 1]} : vector<16x512xf32> to vector<16x128xf32>
    %238 = math.tanh %237 : vector<16x128xf32>
    %239 = vector.extract_strided_slice %222 {offsets = [0, 384], sizes = [16, 128], strides = [1, 1]} : vector<16x512xf32> to vector<16x128xf32>
    %cst_67 = arith.constant 0.000000e+00 : f32
    %240 = vector.broadcast %cst_67 : f32 to vector<16x128xf32>
    %241 = arith.subf %240, %239 : vector<16x128xf32>
    %242 = math.exp %241 : vector<16x128xf32>
    %cst_68 = arith.constant 1.000000e+00 : f32
    %243 = vector.broadcast %cst_68 : f32 to vector<16x128xf32>
    %244 = arith.addf %243, %242 : vector<16x128xf32>
    %245 = tpu.reciprocal %244 {approx = true} : vector<16x128xf32> -> vector<16x128xf32>
    %246 = arith.mulf %236, %213 : vector<16x128xf32>
    %247 = arith.mulf %229, %238 : vector<16x128xf32>
    %248 = arith.addf %246, %247 : vector<16x128xf32>
    %249 = math.tanh %248 : vector<16x128xf32>
    %250 = arith.mulf %245, %249 : vector<16x128xf32>
    %c7_i32 = arith.constant 7 : i32
    %251 = arith.index_cast %c7_i32 : i32 to index
    %c0_69 = arith.constant 0 : index
    %c0_70 = arith.constant 0 : index
    %252 = vector.load %arg2[%251, %c0_69, %c0_70] : memref<8x16x512xbf16, #tpu.memory_space<vmem>>, vector<1x16x512xbf16>
    %253 = vector.shape_cast %252 : vector<1x16x512xbf16> to vector<16x512xbf16>
    %254 = arith.extf %253 : vector<16x512xbf16> to vector<16x512xf32>
    %255 = arith.truncf %250 : vector<16x128xf32> to vector<16x128xbf16>
    %cst_71 = arith.constant dense<0.000000e+00> : vector<16x512xf32>
    %256 = tpu.matmul %255, %3, %cst_71 {dimension_numbers = #tpu.dot_dimension_numbers<[1], [0], [0], [1], [0, 0, 1, 1], [], []>} : vector<16x128xbf16>, vector<128x512xbf16>, vector<16x512xf32> -> vector<16x512xf32>
    %257 = arith.addf %254, %256 : vector<16x512xf32>
    %258 = vector.extract_strided_slice %257 {offsets = [0, 0], sizes = [16, 128], strides = [1, 1]} : vector<16x512xf32> to vector<16x128xf32>
    %cst_72 = arith.constant 0.000000e+00 : f32
    %259 = vector.broadcast %cst_72 : f32 to vector<16x128xf32>
    %260 = arith.subf %259, %258 : vector<16x128xf32>
    %261 = math.exp %260 : vector<16x128xf32>
    %cst_73 = arith.constant 1.000000e+00 : f32
    %262 = vector.broadcast %cst_73 : f32 to vector<16x128xf32>
    %263 = arith.addf %262, %261 : vector<16x128xf32>
    %264 = tpu.reciprocal %263 {approx = true} : vector<16x128xf32> -> vector<16x128xf32>
    %265 = vector.extract_strided_slice %257 {offsets = [0, 128], sizes = [16, 128], strides = [1, 1]} : vector<16x512xf32> to vector<16x128xf32>
    %cst_74 = arith.constant 0.000000e+00 : f32
    %266 = vector.broadcast %cst_74 : f32 to vector<16x128xf32>
    %267 = arith.subf %266, %265 : vector<16x128xf32>
    %268 = math.exp %267 : vector<16x128xf32>
    %cst_75 = arith.constant 1.000000e+00 : f32
    %269 = vector.broadcast %cst_75 : f32 to vector<16x128xf32>
    %270 = arith.addf %269, %268 : vector<16x128xf32>
    %271 = tpu.reciprocal %270 {approx = true} : vector<16x128xf32> -> vector<16x128xf32>
    %272 = vector.extract_strided_slice %257 {offsets = [0, 256], sizes = [16, 128], strides = [1, 1]} : vector<16x512xf32> to vector<16x128xf32>
    %273 = math.tanh %272 : vector<16x128xf32>
    %274 = vector.extract_strided_slice %257 {offsets = [0, 384], sizes = [16, 128], strides = [1, 1]} : vector<16x512xf32> to vector<16x128xf32>
    %cst_76 = arith.constant 0.000000e+00 : f32
    %275 = vector.broadcast %cst_76 : f32 to vector<16x128xf32>
    %276 = arith.subf %275, %274 : vector<16x128xf32>
    %277 = math.exp %276 : vector<16x128xf32>
    %cst_77 = arith.constant 1.000000e+00 : f32
    %278 = vector.broadcast %cst_77 : f32 to vector<16x128xf32>
    %279 = arith.addf %278, %277 : vector<16x128xf32>
    %280 = tpu.reciprocal %279 {approx = true} : vector<16x128xf32> -> vector<16x128xf32>
    %281 = arith.mulf %271, %248 : vector<16x128xf32>
    %282 = arith.mulf %264, %273 : vector<16x128xf32>
    %283 = arith.addf %281, %282 : vector<16x128xf32>
    %284 = math.tanh %283 : vector<16x128xf32>
    %285 = arith.mulf %280, %284 : vector<16x128xf32>
    %c8_i32 = arith.constant 8 : i32
    %c0_78 = arith.constant 0 : index
    %c0_79 = arith.constant 0 : index
    %286 = vector.load %arg5[%c0_78, %c0_79] : memref<16x128xf32, #tpu.memory_space<vmem>>, vector<16x128xf32>
    tpu.vector_store %arg5[%c0_78, %c0_79], %285 {strides = array<i32>} : memref<16x128xf32, #tpu.memory_space<vmem>>, vector<16x128xf32>,
    %c0_80 = arith.constant 0 : index
    %c0_81 = arith.constant 0 : index
    %287 = vector.load %arg6[%c0_80, %c0_81] : memref<16x128xf32, #tpu.memory_space<vmem>>, vector<16x128xf32>
    tpu.vector_store %arg6[%c0_80, %c0_81], %283 {strides = array<i32>} : memref<16x128xf32, #tpu.memory_space<vmem>>, vector<16x128xf32>,
    %c0_i32_82 = arith.constant 0 : i32
    %288 = arith.cmpi eq, %arg1, %c0_i32_82 : i32
    %289 = arith.extui %288 : i1 to i32
    %c0_i32_83 = arith.constant 0 : i32
    %290 = arith.cmpi ne, %289, %c0_i32_83 : i32
    scf.if %290 {
      %c0_84 = arith.constant 0 : index
      %c0_85 = arith.constant 0 : index
      %291 = vector.load %arg5[%c0_84, %c0_85] : memref<16x128xf32, #tpu.memory_space<vmem>>, vector<16x128xf32>
      %c0_86 = arith.constant 0 : index
      %c0_87 = arith.constant 0 : index
      %292 = vector.load %arg4[%c0_86, %c0_87] : memref<16x128xf32, #tpu.memory_space<vmem>>, vector<16x128xf32>
      tpu.vector_store %arg4[%c0_86, %c0_87], %291 {strides = array<i32>} : memref<16x128xf32, #tpu.memory_space<vmem>>, vector<16x128xf32>,
    } else {
    }
    return
  }
  func.func @transform_0(%arg0: i32, %arg1: i32) -> (i32, i32, i32) {
    %c0_i32 = arith.constant 0 : i32
    %c0_i32_0 = arith.constant 0 : i32
    return %arg1, %arg0, %c0_i32 : i32, i32, i32
  }
  func.func @transform_1(%arg0: i32, %arg1: i32) -> (i32, i32) {
    %c0_i32 = arith.constant 0 : i32
    %c0_i32_0 = arith.constant 0 : i32
    %c0_i32_1 = arith.constant 0 : i32
    return %c0_i32, %c0_i32_0 : i32, i32
  }
  func.func @transform_2(%arg0: i32, %arg1: i32) -> (i32, i32) {
    %c0_i32 = arith.constant 0 : i32
    %c0_i32_0 = arith.constant 0 : i32
    return %arg0, %c0_i32 : i32, i32
  }
}

</mosaic_0001>

<bundles_post_ra>
// kernel: lstm_net_forward.1
= control target key start
LH: loop header
LB: loop body
LE: loop exit
PB: predicated region body
PF: predicated region fallthrough
CT: control target
= control target key end

     0   :  { %v1828_v1 = vmov 0   ;;  %v1829_v33 = vmov 0.0|0.0   ;;  %s2595_s1 = inlined_call_operand.vmem [shape: bf16[128,512], index: 1, kind: input, shape index: {}]   ;;  %s2596_s0 = inlined_call_operand.vmem [shape: bf16[8,16,512], index: 0, kind: input, shape index: {}]   ;;  %s2597_s2 = inlined_call_operand.vmem [shape: f32[16,128], index: 2, kind: output, shape index: {}]  }
   0x1   :  { %v1848_v0 = vld [vmem:[%s2595_s1 + $0xe4] ss:$16 sps:$4 sm:$0xff]   ;;  %261 = vmatprep.mubr.bf16.mxu0 %v1828_v1  ;;  %304 = vmatprep.mubr.bf16.mxu1 %v1828_v1  ;;  %v1855_v2 = vld [vmem:[%s2595_s1 + $0xe0] ss:$16 sps:$4 sm:$0xff]   ;;  %v1878_v6 = vld [vmem:[%s2595_s1 + $0xec] ss:$16 sps:$4 sm:$0xff]  }
   0x2   :  { %229 = vmatprep.subr.bf16.mxu0 %v1848_v0  ;;  %v1861_v3 = vld [vmem:[%s2595_s1 + $0xc4] ss:$16 sps:$4 sm:$0xff]   ;;  %v1867_v4 = vld [vmem:[%s2595_s1 + $0xc0] ss:$16 sps:$4 sm:$0xff]   ;;  %v1883_v7 = vld [vmem:[%s2595_s1 + $0xe8] ss:$16 sps:$4 sm:$0xff]   ;;  %272 = vmatprep.subr.bf16.mxu1 %v1878_v6 }
   0x3   :  { %230 = vmatpush1.bf16.msra.mxu0 %v1855_v2  ;;  %v1873_v5 = vld [vmem:[%s2595_s1 + $0xa4] ss:$16 sps:$4 sm:$0xff]   ;;  %v1889_v8 = vld [vmem:[%s2595_s1 + $0xa0] ss:$16 sps:$4 sm:$0xff]   ;;  %273 = vmatpush1.bf16.msra.mxu1 %v1883_v7  ;;  %v1902_v10 = vld [vmem:[%s2595_s1 + $0xcc] ss:$16 sps:$4 sm:$0xff]  }
   0x4   :  { %231 = vmatprep.subr.bf16.mxu0 %v1861_v3  ;;  %v1896_v9 = vld [vmem:[%s2595_s1 + $0x84] ss:$16 sps:$4 sm:$0xff]   ;;  %v1907_v11 = vld [vmem:[%s2595_s1 + $0xc8] ss:$16 sps:$4 sm:$0xff]   ;;  %274 = vmatprep.subr.bf16.mxu1 %v1902_v10  ;;  %v1914_v12 = vld [vmem:[%s2595_s1 + $0x80] ss:$16 sps:$4 sm:$0xff]  }
   0x5   :  { %v1919_v13 = vld [vmem:[%s2595_s1 + $0x64] ss:$16 sps:$4 sm:$0xff]   ;;  %v1924_v14 = vld [vmem:[%s2595_s1 + $0xac] ss:$16 sps:$4 sm:$0xff]   ;;  %v1931_v15 = vld [vmem:[%s2595_s1 + $0xa8] ss:$16 sps:$4 sm:$0xff]  }
   0x6   :  { %v1937_v16 = vld [vmem:[%s2595_s1 + $0x8c] ss:$16 sps:$4 sm:$0xff]   ;;  %v1943_v17 = vld [vmem:[%s2595_s1 + $0x60] ss:$16 sps:$4 sm:$0xff]   ;;  %v1949_v18 = vld [vmem:[%s2595_s1 + $0x44] ss:$16 sps:$4 sm:$0xff]  }
   0x7   :  { %232 = vmatpush1.bf16.msra.mxu0 %v1867_v4  ;;  %275 = vmatpush1.bf16.msra.mxu1 %v1907_v11  ;;  %v1955_v19 = vld [vmem:[%s2595_s1 + $0x88] ss:$16 sps:$4 sm:$0xff]   ;;  %v1961_v20 = vld [vmem:[%s2595_s1 + $0x6c] ss:$16 sps:$4 sm:$0xff]   ;;  %v1967_v21 = vld [vmem:[%s2595_s1 + $0x40] ss:$16 sps:$4 sm:$0xff]  }
   0x8   :  { %233 = vmatprep.subr.bf16.mxu0 %v1873_v5  ;;  %276 = vmatprep.subr.bf16.mxu1 %v1924_v14  ;;  %v1972_v22 = vld [vmem:[%s2595_s1 + $0x24] ss:$16 sps:$4 sm:$0xff]   ;;  %v1979_v23 = vld [vmem:[%s2595_s1 + $0x68] ss:$16 sps:$4 sm:$0xff]   ;;  %v1985_v24 = vld [vmem:[%s2595_s1 + $0x4c] ss:$16 sps:$4 sm:$0xff]  }
   0x9   :  { %v1991_v25 = vld [vmem:[%s2595_s1 + $0x20] ss:$16 sps:$4 sm:$0xff]   ;;  %v1997_v26 = vld [vmem:[%s2595_s1 + $0x4] ss:$16 sps:$4 sm:$0xff]   ;;  %v2003_v27 = vld [vmem:[%s2595_s1 + $0x48] ss:$16 sps:$4 sm:$0xff]  }
   0xa   :  { %v2009_v28 = vld [vmem:[%s2595_s1 + $0x2c] ss:$16 sps:$4 sm:$0xff]   ;;  %v2015_v29 = vld [vmem:[%s2595_s1] ss:$16 sps:$4 sm:$0xff]   ;;  %v2022_v30 = vld [vmem:[%s2595_s1 + $0x28] ss:$16 sps:$4 sm:$0xff]  }
   0xb   :  { %234 = vmatpush1.bf16.msra.mxu0 %v1889_v8  ;;  %277 = vmatpush1.bf16.msra.mxu1 %v1931_v15  ;;  %v2028_v31 = vld [vmem:[%s2595_s1 + $0xc] ss:$16 sps:$4 sm:$0xff]   ;;  %v2035_v32 = vld [vmem:[%s2595_s1 + $0x8] ss:$16 sps:$4 sm:$0xff]   ;;  %v56_v34 = vld [vmem:[%s2596_s0] sm:$0xff] }
   0xc   :  { %235 = vmatprep.subr.bf16.mxu0 %v1896_v9  ;;  %278 = vmatprep.subr.bf16.mxu1 %v1937_v16  ;;  %v60_v35 = vunpack.c.l.bf16 %v56_v34  ;;  %v58_v36 = vld [vmem:[%s2596_s0 + $0x10] sm:$0xff]  ;;  %v61_v37 = vunpack.c.h.bf16 %v56_v34  ;;  %v57_v49 = vld [vmem:[%s2596_s0 + $0x8] sm:$0xff]  ;;  %v59_v56 = vld [vmem:[%s2596_s0 + $0x18] sm:$0xff] }
   0xd   :  { %v64_v40 = vunpack.c.l.bf16 %v58_v36  ;;  %v65_v44 = vunpack.c.h.bf16 %v58_v36  ;;  %v63_v57 = vunpack.c.h.bf16 %v57_v49  ;;  %v67_v61 = vunpack.c.h.bf16 %v59_v56 }
   0xe   :  { %v62_v34 = vunpack.c.l.bf16 %v57_v49 }
   0xf   :  { %236 = vmatpush1.bf16.msra.mxu0 %v1914_v12  ;;  %279 = vmatpush1.bf16.msra.mxu1 %v1955_v19 }
  0x10   :  { %237 = vmatprep.subr.bf16.mxu0 %v1919_v13  ;;  %280 = vmatprep.subr.bf16.mxu1 %v1961_v20 }
  0x13   :  { %238 = vmatpush1.bf16.msra.mxu0 %v1943_v17  ;;  %281 = vmatpush1.bf16.msra.mxu1 %v1979_v23 }
  0x14   :  { %239 = vmatprep.subr.bf16.mxu0 %v1949_v18  ;;  %282 = vmatprep.subr.bf16.mxu1 %v1985_v24 }
  0x17   :  { %240 = vmatpush1.bf16.msra.mxu0 %v1967_v21  ;;  %283 = vmatpush1.bf16.msra.mxu1 %v2003_v27 }
  0x18   :  { %241 = vmatprep.subr.bf16.mxu0 %v1972_v22  ;;  %284 = vmatprep.subr.bf16.mxu1 %v2009_v28 }
  0x1b   :  { %242 = vmatpush1.bf16.msra.mxu0 %v1991_v25  ;;  %285 = vmatpush1.bf16.msra.mxu1 %v2022_v30 }
  0x1c   :  { %243 = vmatprep.subr.bf16.mxu0 %v1997_v26  ;;  %286 = vmatprep.subr.bf16.mxu1 %v2028_v31 }
  0x1f   :  { %244 = vmatpush1.bf16.msra.mxu0 %v2015_v29  ;;  %287 = vmatpush1.bf16.msra.mxu1 %v2035_v32 }
  0x20   :  { %379 = vmatprep.subr.bf16.mxu0 %v1848_v0  ;;  %422 = vmatprep.subr.bf16.mxu1 %v1878_v6 }
  0x22   :  { %262 = vmatmul.mubr.bf16.vlgmr.msra.gmra.mxu0 %v1829_v33  ;;  %305 = vmatmul.mubr.bf16.vlgmr.msra.gmra.mxu1 %v1829_v33 }
  0x23   :  { %380 = vmatpush1.bf16.msra.mxu0 %v1855_v2  ;;  %411 = vmatprep.mubr.bf16.mxu0 %v1828_v1 }
  0x24   :  { %381 = vmatprep.subr.bf16.mxu0 %v1861_v3  ;;  %423 = vmatpush1.bf16.msra.mxu1 %v1883_v7 }
  0x25   :  { %424 = vmatprep.subr.bf16.mxu1 %v1902_v10  ;;  %454 = vmatprep.mubr.bf16.mxu1 %v1828_v1 }
  0x27   :  { %382 = vmatpush1.bf16.msra.mxu0 %v1867_v4 }
  0x28   :  { %383 = vmatprep.subr.bf16.mxu0 %v1873_v5  ;;  %425 = vmatpush1.bf16.msra.mxu1 %v1907_v11 }
  0x29   :  { %426 = vmatprep.subr.bf16.mxu1 %v1924_v14 }
  0x2b   :  { %384 = vmatpush1.bf16.msra.mxu0 %v1889_v8 }
  0x2c   :  { %385 = vmatprep.subr.bf16.mxu0 %v1896_v9  ;;  %427 = vmatpush1.bf16.msra.mxu1 %v1931_v15 }
  0x2d   :  { %428 = vmatprep.subr.bf16.mxu1 %v1937_v16 }
  0x2f   :  { %386 = vmatpush1.bf16.msra.mxu0 %v1914_v12 }
  0x30   :  { %387 = vmatprep.subr.bf16.mxu0 %v1919_v13  ;;  %429 = vmatpush1.bf16.msra.mxu1 %v1955_v19 }
  0x31   :  { %430 = vmatprep.subr.bf16.mxu1 %v1961_v20 }
  0x33   :  { %388 = vmatpush1.bf16.msra.mxu0 %v1943_v17 }
  0x34   :  { %389 = vmatprep.subr.bf16.mxu0 %v1949_v18  ;;  %431 = vmatpush1.bf16.msra.mxu1 %v1979_v23 }
  0x35   :  { %432 = vmatprep.subr.bf16.mxu1 %v1985_v24 }
  0x37   :  { %390 = vmatpush1.bf16.msra.mxu0 %v1967_v21 }
  0x38   :  { %391 = vmatprep.subr.bf16.mxu0 %v1972_v22  ;;  %433 = vmatpush1.bf16.msra.mxu1 %v2003_v27 }
  0x39   :  { %434 = vmatprep.subr.bf16.mxu1 %v2009_v28 }
  0x3b   :  { %392 = vmatpush1.bf16.msra.mxu0 %v1991_v25 }
  0x3c   :  { %393 = vmatprep.subr.bf16.mxu0 %v1997_v26  ;;  %435 = vmatpush1.bf16.msra.mxu1 %v2022_v30 }
  0x3d   :  { %436 = vmatprep.subr.bf16.mxu1 %v2028_v31 }
  0x3f   :  { %394 = vmatpush1.bf16.msra.mxu0 %v2015_v29 }
  0x40   :  { %529 = vmatprep.subr.bf16.mxu0 %v1848_v0  ;;  %437 = vmatpush1.bf16.msra.mxu1 %v2035_v32 }
  0x41   :  { %572 = vmatprep.subr.bf16.mxu1 %v1878_v6 }
  0xe2   :  { %v263_v38 = vpop.f32.mrf.mxu0  ;;  %v306_v50 = vpop.f32.mrf.mxu1 }
  0xe3   :  { %v315_v39 = vadd.f32 %v263_v38, %v60_v35 }
  0xe4   :  { %v265_v41 = vpop.f32.mrf.mxu0  ;;  %v308_v55 = vpop.f32.mrf.mxu1 }
  0xe5   :  { %v323_v42 = vsub.f32 0.0, %v315_v39  ;;  %v316_v43 = vadd.f32 %v265_v41, %v61_v37  ;;  %v318_v33 = vadd.f32 %v308_v55, %v63_v57  ;;  %v317_v37 = vadd.f32 %v306_v50, %v62_v34 }
  0xe6   :  { %v267_v45 = vpop.f32.mrf.mxu0  ;;  %v310_v60 = vpop.f32.mrf.mxu1  ;;  %v66_v41 = vunpack.c.l.bf16 %v59_v56 }
  0xe7   :  { %v325_v46 = vmul.f32 1.442695, %v323_v42  ;;  %v333_v47 = vsub.f32 0.0, %v316_v43  ;;  %v319_v48 = vadd.f32 %v267_v45, %v64_v40  ;;  %v345_v36 = vsub.f32 0.0, %v318_v33 }
  0xe8   :  { %v269_v51 = vpop.f32.mrf.mxu0  ;;  %v312_v63 = vpop.f32.mrf.mxu1 }
  0xe9   :  { %1540 = vpow2.f32 %v325_v46  ;;  %v335_v52 = vmul.f32 1.442695, %v333_v47  ;;  %v324_v53 = vsub.f32 0.0, %v319_v48  ;;  %v320_v54 = vadd.f32 %v269_v51, %v65_v44 }
  0xea   :  { %v322_v35 = vadd.f32 %v312_v63, %v67_v61  ;;  %v347_v40 = vmul.f32 1.442695, %v345_v36  ;;  %v321_v47 = vadd.f32 %v310_v60, %v66_v41 }
  0xeb   :  { %1542 = vpow2.f32 %v335_v52  ;;  %v327_v58 = vmul.f32 1.442695, %v324_v53  ;;  %v334_v59 = vsub.f32 0.0, %v320_v54 }
  0xec   :  { %v346_v38 = vsub.f32 0.0, %v322_v35 }
  0xed   :  { %1544 = vpow2.f32 %v327_v58  ;;  %v337_v62 = vmul.f32 1.442695, %v334_v59 }
  0xee   :  { %v349_v44 = vmul.f32 1.442695, %v346_v38 }
  0xef   :  { %1546 = vpow2.f32 %v337_v62 }
  0xf0   :  { %1548 = vtanh.f32 %v317_v37 }
  0xf6   :  { %v1541_v39 = vpop.eup %1540 }
  0xf7   :  { %v329_v42 = vadd.f32 1.0, %v1541_v39 }
  0xf8   :  { %v1543_v43 = vpop.eup %1542 }
  0xf9   :  { %1550 = vrcp.f32 %v329_v42  ;;  %v339_v45 = vadd.f32 1.0, %v1543_v43  ;;  %v1462_v43 = vld [vmem:[%s2596_s0 + $0x20] sm:$0xff] }
  0xfa   :  { %v1545_v46 = vpop.eup %1544  ;;  %1552 = vpow2.f32 %v347_v40 }
  0xfb   :  { %1554 = vrcp.f32 %v339_v45  ;;  %v330_v48 = vadd.f32 1.0, %v1545_v46  ;;  %v1464_v45 = vld [vmem:[%s2596_s0 + $0x30] sm:$0xff]  ;;  %v371_v46 = vunpack.c.h.bf16 %v1462_v43 }
  0xfc   :  { %v1547_v51 = vpop.eup %1546  ;;  %1556 = vpow2.f32 %v349_v44  ;;  %v370_v44 = vunpack.c.l.bf16 %v1462_v43 }
  0xfd   :  { %1558 = vrcp.f32 %v330_v48  ;;  %v340_v49 = vadd.f32 1.0, %v1547_v51  ;;  %v1549_v50 = vpop.eup %1548 }
  0xfe   :  { %1560 = vtanh.f32 %v321_v47 }
  0xff   :  { %1562 = vrcp.f32 %v340_v49  ;;  %v374_v49 = vunpack.c.l.bf16 %v1464_v45 }
 0x106   :  { %v1551_v52 = vpop.eup %1550 }
 0x107   :  { %v1553_v53 = vpop.eup %1552  ;;  %v357_v57 = vmul.f32 %v1551_v52, %v1549_v50 }
 0x108   :  { %v1555_v54 = vpop.eup %1554  ;;  %v351_v59 = vadd.f32 1.0, %v1553_v53 }
 0x109   :  { %v1557_v55 = vpop.eup %1556  ;;  %v355_v56 = vmul.f32 0.0, %v1555_v54 }
 0x10a   :  { %v1559_v58 = vpop.eup %1558  ;;  %v352_v63 = vadd.f32 1.0, %v1557_v55  ;;  %1564 = vrcp.f32 %v351_v59 }
 0x10b   :  { %v1561_v61 = vpop.eup %1560  ;;  %v2087_v62 = vadd.f32 %v357_v57, %v355_v56  ;;  %v375_v56 = vunpack.c.h.bf16 %v1464_v45 }
 0x10c   :  { %v1563_v60 = vpop.eup %1562  ;;  %v358_v34 = vmul.f32 %v1561_v61, %v1559_v58  ;;  %v1463_v61 = vld [vmem:[%s2596_s0 + $0x28] sm:$0xff] }
 0x10d   :  { %v356_v33 = vmul.f32 0.0, %v1563_v60  ;;  %1566 = vtanh.f32 %v2087_v62 }
 0x10e   :  { %1568 = vrcp.f32 %v352_v63 }
 0x10f   :  { %v2090_v35 = vadd.f32 %v358_v34, %v356_v33  ;;  %v373_v33 = vunpack.c.h.bf16 %v1463_v61 }
 0x111   :  { %1570 = vtanh.f32 %v2090_v35 }
 0x117   :  { %v1565_v36 = vpop.eup %1564 }
 0x11a   :  { %v1567_v37 = vpop.eup %1566 }
 0x11b   :  { %v1569_v38 = vpop.eup %1568  ;;  %v363_v40 = vmul.f32 %v1567_v37, %v1565_v36 }
 0x11e   :  { %v1571_v39 = vpop.eup %1570 }
 0x11f   :  { %v364_v41 = vmul.f32 %v1571_v39, %v1569_v38  ;;  %v1465_v39 = vld [vmem:[%s2596_s0 + $0x38] sm:$0xff] }
 0x121   :  { %v378_v42 = vpack.c.bf16 %v364_v41, %v363_v40 }
 0x123   :  { %412 = vmatmul.mubr.bf16.vlgmr.msra.gmra.mxu0 %v378_v42  ;;  %455 = vmatmul.mubr.bf16.vlgmr.msra.gmra.mxu1 %v378_v42  ;;  %v377_v42 = vunpack.c.h.bf16 %v1465_v39 }
 0x124   :  { %530 = vmatpush1.bf16.msra.mxu0 %v1855_v2  ;;  %573 = vmatpush1.bf16.msra.mxu1 %v1883_v7 }
 0x125   :  { %531 = vmatprep.subr.bf16.mxu0 %v1861_v3  ;;  %574 = vmatprep.subr.bf16.mxu1 %v1902_v10 }
 0x126   :  { %561 = vmatprep.mubr.bf16.mxu0 %v1828_v1  ;;  %604 = vmatprep.mubr.bf16.mxu1 %v1828_v1 }
 0x128   :  { %532 = vmatpush1.bf16.msra.mxu0 %v1867_v4  ;;  %575 = vmatpush1.bf16.msra.mxu1 %v1907_v11 }
 0x129   :  { %533 = vmatprep.subr.bf16.mxu0 %v1873_v5  ;;  %576 = vmatprep.subr.bf16.mxu1 %v1924_v14 }
 0x12c   :  { %534 = vmatpush1.bf16.msra.mxu0 %v1889_v8  ;;  %577 = vmatpush1.bf16.msra.mxu1 %v1931_v15 }
 0x12d   :  { %535 = vmatprep.subr.bf16.mxu0 %v1896_v9  ;;  %578 = vmatprep.subr.bf16.mxu1 %v1937_v16 }
 0x130   :  { %536 = vmatpush1.bf16.msra.mxu0 %v1914_v12  ;;  %579 = vmatpush1.bf16.msra.mxu1 %v1955_v19 }
 0x131   :  { %537 = vmatprep.subr.bf16.mxu0 %v1919_v13  ;;  %580 = vmatprep.subr.bf16.mxu1 %v1961_v20 }
 0x134   :  { %538 = vmatpush1.bf16.msra.mxu0 %v1943_v17  ;;  %581 = vmatpush1.bf16.msra.mxu1 %v1979_v23 }
 0x135   :  { %539 = vmatprep.subr.bf16.mxu0 %v1949_v18  ;;  %582 = vmatprep.subr.bf16.mxu1 %v1985_v24 }
 0x138   :  { %540 = vmatpush1.bf16.msra.mxu0 %v1967_v21  ;;  %583 = vmatpush1.bf16.msra.mxu1 %v2003_v27 }
 0x139   :  { %541 = vmatprep.subr.bf16.mxu0 %v1972_v22  ;;  %584 = vmatprep.subr.bf16.mxu1 %v2009_v28 }
 0x13c   :  { %542 = vmatpush1.bf16.msra.mxu0 %v1991_v25  ;;  %585 = vmatpush1.bf16.msra.mxu1 %v2022_v30 }
 0x13d   :  { %543 = vmatprep.subr.bf16.mxu0 %v1997_v26  ;;  %586 = vmatprep.subr.bf16.mxu1 %v2028_v31 }
 0x140   :  { %544 = vmatpush1.bf16.msra.mxu0 %v2015_v29  ;;  %587 = vmatpush1.bf16.msra.mxu1 %v2035_v32 }
 0x141   :  { %679 = vmatprep.subr.bf16.mxu0 %v1848_v0  ;;  %722 = vmatprep.subr.bf16.mxu1 %v1878_v6 }
 0x1e3   :  { %v413_v47 = vpop.f32.mrf.mxu0  ;;  %v456_v48 = vpop.f32.mrf.mxu1 }
 0x1e4   :  { %v465_v51 = vadd.f32 %v413_v47, %v370_v44  ;;  %v372_v47 = vunpack.c.l.bf16 %v1463_v61 }
 0x1e5   :  { %v415_v50 = vpop.f32.mrf.mxu0  ;;  %v458_v54 = vpop.f32.mrf.mxu1 }
 0x1e6   :  { %v473_v52 = vsub.f32 0.0, %v465_v51  ;;  %v466_v53 = vadd.f32 %v415_v50, %v371_v46  ;;  %v468_v41 = vadd.f32 %v458_v54, %v373_v33 }
 0x1e7   :  { %v417_v55 = vpop.f32.mrf.mxu0  ;;  %v460_v36 = vpop.f32.mrf.mxu1 }
 0x1e8   :  { %v475_v57 = vmul.f32 1.442695, %v473_v52  ;;  %v483_v58 = vsub.f32 0.0, %v466_v53  ;;  %v469_v59 = vadd.f32 %v417_v55, %v374_v49  ;;  %v495_v45 = vsub.f32 0.0, %v468_v41 }
 0x1e9   :  { %v419_v60 = vpop.f32.mrf.mxu0  ;;  %v462_v44 = vpop.f32.mrf.mxu1  ;;  %v376_v53 = vunpack.c.l.bf16 %v1465_v39 }
 0x1ea   :  { %1572 = vpow2.f32 %v475_v57  ;;  %v485_v63 = vmul.f32 1.442695, %v483_v58  ;;  %v474_v34 = vsub.f32 0.0, %v469_v59  ;;  %v470_v37 = vadd.f32 %v419_v60, %v375_v56 }
 0x1eb   :  { %v472_v46 = vadd.f32 %v462_v44, %v377_v42  ;;  %v497_v51 = vmul.f32 1.442695, %v495_v45  ;;  %v467_v56 = vadd.f32 %v456_v48, %v372_v47  ;;  %v471_v60 = vadd.f32 %v460_v36, %v376_v53 }
 0x1ec   :  { %1574 = vpow2.f32 %v485_v63  ;;  %v477_v38 = vmul.f32 1.442695, %v474_v34  ;;  %v484_v40 = vsub.f32 0.0, %v470_v37 }
 0x1ed   :  { %v496_v49 = vsub.f32 0.0, %v472_v46 }
 0x1ee   :  { %1576 = vpow2.f32 %v477_v38  ;;  %v487_v43 = vmul.f32 1.442695, %v484_v40 }
 0x1ef   :  { %v499_v58 = vmul.f32 1.442695, %v496_v49 }
 0x1f0   :  { %1578 = vpow2.f32 %v487_v43 }
 0x1f1   :  { %1580 = vpow2.f32 %v497_v51 }
 0x1f7   :  { %v1573_v50 = vpop.eup %1572 }
 0x1f8   :  { %v479_v52 = vadd.f32 1.0, %v1573_v50 }
 0x1f9   :  { %v1575_v55 = vpop.eup %1574 }
 0x1fa   :  { %v489_v57 = vadd.f32 1.0, %v1575_v55  ;;  %1582 = vrcp.f32 %v479_v52 }
 0x1fb   :  { %v1577_v59 = vpop.eup %1576 }
 0x1fc   :  { %1584 = vrcp.f32 %v489_v57  ;;  %v480_v54 = vadd.f32 1.0, %v1577_v59 }
 0x1fd   :  { %1586 = vtanh.f32 %v467_v56  ;;  %v1579_v63 = vpop.eup %1578 }
 0x1fe   :  { %1588 = vpow2.f32 %v499_v58  ;;  %v490_v61 = vadd.f32 1.0, %v1579_v63  ;;  %v1581_v33 = vpop.eup %1580  ;;  %v1468_v58 = vld [vmem:[%s2596_s0 + $0x50] sm:$0xff] }
 0x1ff   :  { %1590 = vrcp.f32 %v480_v54  ;;  %v501_v42 = vadd.f32 1.0, %v1581_v33 }
 0x200   :  { %1592 = vtanh.f32 %v471_v60 }
 0x201   :  { %1594 = vrcp.f32 %v490_v61  ;;  %v524_v61 = vunpack.c.l.bf16 %v1468_v58 }
 0x202   :  { %1596 = vrcp.f32 %v501_v42 }
 0x207   :  { %v1583_v34 = vpop.eup %1582 }
 0x209   :  { %v1585_v37 = vpop.eup %1584 }
 0x20a   :  { %v1587_v38 = vpop.eup %1586  ;;  %v505_v48 = vmul.f32 %v1585_v37, %v2087_v62 }
 0x20b   :  { %v1589_v39 = vpop.eup %1588  ;;  %v507_v40 = vmul.f32 %v1587_v38, %v1583_v34 }
 0x20c   :  { %v1591_v41 = vpop.eup %1590  ;;  %v502_v45 = vadd.f32 1.0, %v1589_v39  ;;  %v525_v39 = vunpack.c.h.bf16 %v1468_v58 }
 0x20d   :  { %v1593_v43 = vpop.eup %1592  ;;  %v2140_v44 = vadd.f32 %v507_v40, %v505_v48 }
 0x20e   :  { %v1595_v36 = vpop.eup %1594  ;;  %v508_v46 = vmul.f32 %v1593_v43, %v1591_v41  ;;  %v1467_v43 = vld [vmem:[%s2596_s0 + $0x48] sm:$0xff] }
 0x20f   :  { %v506_v47 = vmul.f32 %v1595_v36, %v2090_v35  ;;  %1598 = vtanh.f32 %v2140_v44  ;;  %v1597_v62 = vpop.eup %1596  ;;  %v1466_v35 = vld [vmem:[%s2596_s0 + $0x40] sm:$0xff] }
 0x210   :  { %1600 = vrcp.f32 %v502_v45  ;;  %v520_v57 = vunpack.c.l.bf16 %v1466_v35  ;;  %v521_v59 = vunpack.c.h.bf16 %v1466_v35 }
 0x211   :  { %v2143_v51 = vadd.f32 %v508_v46, %v506_v47  ;;  %v523_v46 = vunpack.c.h.bf16 %v1467_v43 }
 0x213   :  { %1602 = vtanh.f32 %v2143_v51 }
 0x21c   :  { %v1599_v49 = vpop.eup %1598 }
 0x21d   :  { %v1601_v50 = vpop.eup %1600  ;;  %v513_v53 = vmul.f32 %v1599_v49, %v1597_v62 }
 0x220   :  { %v1603_v52 = vpop.eup %1602 }
 0x221   :  { %v514_v55 = vmul.f32 %v1603_v52, %v1601_v50  ;;  %v1469_v52 = vld [vmem:[%s2596_s0 + $0x58] sm:$0xff] }
 0x223   :  { %v528_v56 = vpack.c.bf16 %v514_v55, %v513_v53 }
 0x225   :  { %562 = vmatmul.mubr.bf16.vlgmr.msra.gmra.mxu0 %v528_v56  ;;  %605 = vmatmul.mubr.bf16.vlgmr.msra.gmra.mxu1 %v528_v56  ;;  %v527_v56 = vunpack.c.h.bf16 %v1469_v52 }
 0x226   :  { %680 = vmatpush1.bf16.msra.mxu0 %v1855_v2  ;;  %723 = vmatpush1.bf16.msra.mxu1 %v1883_v7 }
 0x227   :  { %681 = vmatprep.subr.bf16.mxu0 %v1861_v3  ;;  %724 = vmatprep.subr.bf16.mxu1 %v1902_v10 }
 0x228   :  { %711 = vmatprep.mubr.bf16.mxu0 %v1828_v1  ;;  %754 = vmatprep.mubr.bf16.mxu1 %v1828_v1 }
 0x22a   :  { %682 = vmatpush1.bf16.msra.mxu0 %v1867_v4  ;;  %725 = vmatpush1.bf16.msra.mxu1 %v1907_v11 }
 0x22b   :  { %683 = vmatprep.subr.bf16.mxu0 %v1873_v5  ;;  %726 = vmatprep.subr.bf16.mxu1 %v1924_v14 }
 0x22e   :  { %684 = vmatpush1.bf16.msra.mxu0 %v1889_v8  ;;  %727 = vmatpush1.bf16.msra.mxu1 %v1931_v15 }
 0x22f   :  { %685 = vmatprep.subr.bf16.mxu0 %v1896_v9  ;;  %728 = vmatprep.subr.bf16.mxu1 %v1937_v16 }
 0x232   :  { %686 = vmatpush1.bf16.msra.mxu0 %v1914_v12  ;;  %729 = vmatpush1.bf16.msra.mxu1 %v1955_v19 }
 0x233   :  { %687 = vmatprep.subr.bf16.mxu0 %v1919_v13  ;;  %730 = vmatprep.subr.bf16.mxu1 %v1961_v20 }
 0x236   :  { %688 = vmatpush1.bf16.msra.mxu0 %v1943_v17  ;;  %731 = vmatpush1.bf16.msra.mxu1 %v1979_v23 }
 0x237   :  { %689 = vmatprep.subr.bf16.mxu0 %v1949_v18  ;;  %732 = vmatprep.subr.bf16.mxu1 %v1985_v24 }
 0x23a   :  { %690 = vmatpush1.bf16.msra.mxu0 %v1967_v21  ;;  %733 = vmatpush1.bf16.msra.mxu1 %v2003_v27 }
 0x23b   :  { %691 = vmatprep.subr.bf16.mxu0 %v1972_v22  ;;  %734 = vmatprep.subr.bf16.mxu1 %v2009_v28 }
 0x23e   :  { %692 = vmatpush1.bf16.msra.mxu0 %v1991_v25  ;;  %735 = vmatpush1.bf16.msra.mxu1 %v2022_v30 }
 0x23f   :  { %693 = vmatprep.subr.bf16.mxu0 %v1997_v26  ;;  %736 = vmatprep.subr.bf16.mxu1 %v2028_v31 }
 0x242   :  { %694 = vmatpush1.bf16.msra.mxu0 %v2015_v29  ;;  %737 = vmatpush1.bf16.msra.mxu1 %v2035_v32 }
 0x243   :  { %829 = vmatprep.subr.bf16.mxu0 %v1848_v0  ;;  %872 = vmatprep.subr.bf16.mxu1 %v1878_v6 }
 0x2e5   :  { %v563_v54 = vpop.f32.mrf.mxu0  ;;  %v606_v60 = vpop.f32.mrf.mxu1 }
 0x2e6   :  { %v615_v63 = vadd.f32 %v563_v54, %v520_v57  ;;  %v522_v54 = vunpack.c.l.bf16 %v1467_v43 }
 0x2e7   :  { %v565_v33 = vpop.f32.mrf.mxu0  ;;  %v608_v38 = vpop.f32.mrf.mxu1 }
 0x2e8   :  { %v623_v34 = vsub.f32 0.0, %v615_v63  ;;  %v616_v37 = vadd.f32 %v565_v33, %v521_v59  ;;  %v618_v55 = vadd.f32 %v608_v38, %v523_v46 }
 0x2e9   :  { %v567_v48 = vpop.f32.mrf.mxu0  ;;  %v610_v62 = vpop.f32.mrf.mxu1 }
 0x2ea   :  { %v625_v40 = vmul.f32 1.442695, %v623_v34  ;;  %v633_v41 = vsub.f32 0.0, %v616_v37  ;;  %v619_v42 = vadd.f32 %v567_v48, %v524_v61  ;;  %v645_v58 = vsub.f32 0.0, %v618_v55 }
 0x2eb   :  { %v569_v36 = vpop.f32.mrf.mxu0  ;;  %v612_v57 = vpop.f32.mrf.mxu1  ;;  %v526_v37 = vunpack.c.l.bf16 %v1469_v52 }
 0x2ec   :  { %1604 = vpow2.f32 %v625_v40  ;;  %v635_v45 = vmul.f32 1.442695, %v633_v41  ;;  %v624_v47 = vsub.f32 0.0, %v619_v42  ;;  %v620_v49 = vadd.f32 %v569_v36, %v525_v39 }
 0x2ed   :  { %v622_v59 = vadd.f32 %v612_v57, %v527_v56  ;;  %v647_v63 = vmul.f32 1.442695, %v645_v58  ;;  %v617_v39 = vadd.f32 %v606_v60, %v522_v54  ;;  %v621_v36 = vadd.f32 %v610_v62, %v526_v37 }
 0x2ee   :  { %1606 = vpow2.f32 %v635_v45  ;;  %v627_v50 = vmul.f32 1.442695, %v624_v47  ;;  %v634_v53 = vsub.f32 0.0, %v620_v49 }
 0x2ef   :  { %v646_v61 = vsub.f32 0.0, %v622_v59 }
 0x2f0   :  { %1608 = vpow2.f32 %v627_v50  ;;  %v637_v35 = vmul.f32 1.442695, %v634_v53 }
 0x2f1   :  { %v649_v41 = vmul.f32 1.442695, %v646_v61 }
 0x2f2   :  { %1610 = vpow2.f32 %v637_v35 }
 0x2f3   :  { %1612 = vpow2.f32 %v647_v63 }
 0x2f9   :  { %v1605_v33 = vpop.eup %1604 }
 0x2fa   :  { %v629_v34 = vadd.f32 1.0, %v1605_v33 }
 0x2fb   :  { %v1607_v48 = vpop.eup %1606 }
 0x2fc   :  { %v639_v40 = vadd.f32 1.0, %v1607_v48  ;;  %1614 = vrcp.f32 %v629_v34 }
 0x2fd   :  { %v1609_v42 = vpop.eup %1608 }
 0x2fe   :  { %1616 = vrcp.f32 %v639_v40  ;;  %v630_v38 = vadd.f32 1.0, %v1609_v42 }
 0x2ff   :  { %1618 = vtanh.f32 %v617_v39  ;;  %v1611_v45 = vpop.eup %1610 }
 0x300   :  { %1620 = vpow2.f32 %v649_v41  ;;  %v640_v43 = vadd.f32 1.0, %v1611_v45  ;;  %v1613_v46 = vpop.eup %1612 }
 0x301   :  { %1622 = vrcp.f32 %v630_v38  ;;  %v651_v56 = vadd.f32 1.0, %v1613_v46 }
 0x302   :  { %1624 = vtanh.f32 %v621_v36 }
 0x303   :  { %1626 = vrcp.f32 %v640_v43 }
 0x304   :  { %1628 = vrcp.f32 %v651_v56 }
 0x309   :  { %v1615_v47 = vpop.eup %1614 }
 0x30b   :  { %v1617_v49 = vpop.eup %1616 }
 0x30c   :  { %v1619_v50 = vpop.eup %1618  ;;  %v655_v60 = vmul.f32 %v1617_v49, %v2140_v44 }
 0x30d   :  { %v1621_v52 = vpop.eup %1620  ;;  %v657_v53 = vmul.f32 %v1619_v50, %v1615_v47 }
 0x30e   :  { %v1623_v55 = vpop.eup %1622  ;;  %v652_v58 = vadd.f32 1.0, %v1621_v52 }
 0x30f   :  { %v1625_v35 = vpop.eup %1624  ;;  %v2194_v57 = vadd.f32 %v657_v53, %v655_v60 }
 0x310   :  { %v1627_v62 = vpop.eup %1626  ;;  %v658_v59 = vmul.f32 %v1625_v35, %v1623_v55 }
 0x311   :  { %v656_v54 = vmul.f32 %v1627_v62, %v2143_v51  ;;  %1630 = vtanh.f32 %v2194_v57  ;;  %v1629_v44 = vpop.eup %1628 }
 0x312   :  { %1632 = vrcp.f32 %v652_v58 }
 0x313   :  { %v2197_v63 = vadd.f32 %v658_v59, %v656_v54 }
 0x315   :  { %1634 = vtanh.f32 %v2197_v63 }
 0x31e   :  { %v1631_v61 = vpop.eup %1630 }
 0x31f   :  { %v1633_v33 = vpop.eup %1632  ;;  %v663_v37 = vmul.f32 %v1631_v61, %v1629_v44 }
 0x322   :  { %v1635_v34 = vpop.eup %1634 }
 0x323   :  { %v664_v48 = vmul.f32 %v1635_v34, %v1633_v33 }
 0x325   :  { %v678_v39 = vpack.c.bf16 %v664_v48, %v663_v37 }
 0x327   :  { %712 = vmatmul.mubr.bf16.vlgmr.msra.gmra.mxu0 %v678_v39  ;;  %755 = vmatmul.mubr.bf16.vlgmr.msra.gmra.mxu1 %v678_v39 }
 0x328   :  { %830 = vmatpush1.bf16.msra.mxu0 %v1855_v2  ;;  %873 = vmatpush1.bf16.msra.mxu1 %v1883_v7  ;;  %v1470_v2 = vld [vmem:[%s2596_s0 + $0x60] sm:$0xff] }
 0x329   :  { %831 = vmatprep.subr.bf16.mxu0 %v1861_v3  ;;  %874 = vmatprep.subr.bf16.mxu1 %v1902_v10  ;;  %v670_v3 = vunpack.c.l.bf16 %v1470_v2 }
 0x32a   :  { %861 = vmatprep.mubr.bf16.mxu0 %v1828_v1  ;;  %904 = vmatprep.mubr.bf16.mxu1 %v1828_v1 }
 0x32c   :  { %832 = vmatpush1.bf16.msra.mxu0 %v1867_v4  ;;  %875 = vmatpush1.bf16.msra.mxu1 %v1907_v11  ;;  %v1472_v4 = vld [vmem:[%s2596_s0 + $0x70] sm:$0xff] }
 0x32d   :  { %833 = vmatprep.subr.bf16.mxu0 %v1873_v5  ;;  %876 = vmatprep.subr.bf16.mxu1 %v1924_v14  ;;  %v671_v5 = vunpack.c.h.bf16 %v1470_v2  ;;  %v674_v10 = vunpack.c.l.bf16 %v1472_v4 }
 0x330   :  { %834 = vmatpush1.bf16.msra.mxu0 %v1889_v8  ;;  %877 = vmatpush1.bf16.msra.mxu1 %v1931_v15 }
 0x331   :  { %835 = vmatprep.subr.bf16.mxu0 %v1896_v9  ;;  %878 = vmatprep.subr.bf16.mxu1 %v1937_v16 }
 0x334   :  { %836 = vmatpush1.bf16.msra.mxu0 %v1914_v12  ;;  %879 = vmatpush1.bf16.msra.mxu1 %v1955_v19 }
 0x335   :  { %837 = vmatprep.subr.bf16.mxu0 %v1919_v13  ;;  %880 = vmatprep.subr.bf16.mxu1 %v1961_v20 }
 0x338   :  { %838 = vmatpush1.bf16.msra.mxu0 %v1943_v17  ;;  %881 = vmatpush1.bf16.msra.mxu1 %v1979_v23 }
 0x339   :  { %839 = vmatprep.subr.bf16.mxu0 %v1949_v18  ;;  %882 = vmatprep.subr.bf16.mxu1 %v1985_v24  ;;  %v1471_v18 = vld [vmem:[%s2596_s0 + $0x68] sm:$0xff] }
 0x33a   :  { %v672_v40 = vunpack.c.l.bf16 %v1471_v18 }
 0x33c   :  { %840 = vmatpush1.bf16.msra.mxu0 %v1967_v21  ;;  %883 = vmatpush1.bf16.msra.mxu1 %v2003_v27  ;;  %v673_v21 = vunpack.c.h.bf16 %v1471_v18  ;;  %v2314_v18 = vld [vmem:[%s2595_s1 + $0xa8] ss:$16 sps:$4 sm:$0xff]  }
 0x33d   :  { %841 = vmatprep.subr.bf16.mxu0 %v1972_v22  ;;  %884 = vmatprep.subr.bf16.mxu1 %v2009_v28 }
 0x340   :  { %842 = vmatpush1.bf16.msra.mxu0 %v1991_v25  ;;  %885 = vmatpush1.bf16.msra.mxu1 %v2022_v30 }
 0x341   :  { %843 = vmatprep.subr.bf16.mxu0 %v1997_v26  ;;  %886 = vmatprep.subr.bf16.mxu1 %v2028_v31  ;;  %v1473_v26 = vld [vmem:[%s2596_s0 + $0x78] sm:$0xff] }
 0x342   :  { %v676_v45 = vunpack.c.l.bf16 %v1473_v26 }
 0x344   :  { %844 = vmatpush1.bf16.msra.mxu0 %v2015_v29  ;;  %887 = vmatpush1.bf16.msra.mxu1 %v2035_v32  ;;  %v677_v29 = vunpack.c.h.bf16 %v1473_v26  ;;  %v2362_v26 = vld [vmem:[%s2595_s1 + $0x68] ss:$16 sps:$4 sm:$0xff]  }
 0x345   :  { %979 = vmatprep.subr.bf16.mxu0 %v1848_v0  ;;  %1022 = vmatprep.subr.bf16.mxu1 %v1878_v6  ;;  %v675_v6 = vunpack.c.h.bf16 %v1472_v4 }
 0x3e7   :  { %v713_v7 = vpop.f32.mrf.mxu0  ;;  %v756_v8 = vpop.f32.mrf.mxu1 }
 0x3e8   :  { %v765_v9 = vadd.f32 %v713_v7, %v670_v3  ;;  %v767_v46 = vadd.f32 %v756_v8, %v672_v40  ;;  %v2410_v40 = vld [vmem:[%s2595_s1 + $0x28] ss:$16 sps:$4 sm:$0xff]  }
 0x3e9   :  { %v715_v11 = vpop.f32.mrf.mxu0  ;;  %v758_v0 = vpop.f32.mrf.mxu1 }
 0x3ea   :  { %v773_v12 = vsub.f32 0.0, %v765_v9  ;;  %v766_v13 = vadd.f32 %v715_v11, %v671_v5  ;;  %v768_v28 = vadd.f32 %v758_v0, %v673_v21  ;;  %v2276_v0 = vld [vmem:[%s2595_s1 + $0xcc] ss:$16 sps:$4 sm:$0xff]   ;;  %v2332_v21 = vld [vmem:[%s2595_s1 + $0x80] ss:$16 sps:$4 sm:$0xff]  }
 0x3eb   :  { %v717_v14 = vpop.f32.mrf.mxu0  ;;  %v760_v23 = vpop.f32.mrf.mxu1 }
 0x3ec   :  { %v775_v15 = vmul.f32 1.442695, %v773_v12  ;;  %v783_v16 = vsub.f32 0.0, %v766_v13  ;;  %v769_v17 = vadd.f32 %v717_v14, %v674_v10  ;;  %v795_v32 = vsub.f32 0.0, %v768_v28  ;;  %v2264_v12 = vld [vmem:[%s2595_s1 + $0xe8] ss:$16 sps:$4 sm:$0xff]  }
 0x3ed   :  { %v719_v19 = vpop.f32.mrf.mxu0  ;;  %v762_v31 = vpop.f32.mrf.mxu1  ;;  %v771_v52 = vadd.f32 %v760_v23, %v676_v45  ;;  %v2270_v13 = vld [vmem:[%s2595_s1 + $0xc4] ss:$16 sps:$4 sm:$0xff]   ;;  %v2284_v14 = vld [vmem:[%s2595_s1 + $0xc0] ss:$16 sps:$4 sm:$0xff]   ;;  %v2374_v28 = vld [vmem:[%s2595_s1 + $0x4c] ss:$16 sps:$4 sm:$0xff]  }
 0x3ee   :  { %1636 = vpow2.f32 %v775_v15  ;;  %v785_v20 = vmul.f32 1.442695, %v783_v16  ;;  %v774_v22 = vsub.f32 0.0, %v769_v17  ;;  %v770_v24 = vadd.f32 %v719_v19, %v675_v6  ;;  %v2290_v6 = vld [vmem:[%s2595_s1 + $0xc8] ss:$16 sps:$4 sm:$0xff]  }
 0x3ef   :  { %v772_v51 = vadd.f32 %v762_v31, %v677_v29  ;;  %v797_v41 = vmul.f32 1.442695, %v795_v32  ;;  %v2296_v15 = vld [vmem:[%s2595_s1 + $0xa4] ss:$16 sps:$4 sm:$0xff]   ;;  %v2302_v16 = vld [vmem:[%s2595_s1 + $0xac] ss:$16 sps:$4 sm:$0xff]  }
 0x3f0   :  { %1638 = vpow2.f32 %v785_v20  ;;  %v777_v25 = vmul.f32 1.442695, %v774_v22  ;;  %v784_v27 = vsub.f32 0.0, %v770_v24  ;;  %v2308_v17 = vld [vmem:[%s2595_s1 + $0xa0] ss:$16 sps:$4 sm:$0xff]  }
 0x3f1   :  { %v796_v42 = vsub.f32 0.0, %v772_v51  ;;  %v2320_v19 = vld [vmem:[%s2595_s1 + $0x84] ss:$16 sps:$4 sm:$0xff]   ;;  %v2326_v20 = vld [vmem:[%s2595_s1 + $0x8c] ss:$16 sps:$4 sm:$0xff]  }
 0x3f2   :  { %1640 = vpow2.f32 %v777_v25  ;;  %v787_v30 = vmul.f32 1.442695, %v784_v27  ;;  %v2338_v22 = vld [vmem:[%s2595_s1 + $0x88] ss:$16 sps:$4 sm:$0xff]   ;;  %v2344_v23 = vld [vmem:[%s2595_s1 + $0x64] ss:$16 sps:$4 sm:$0xff]  }
 0x3f3   :  { %v799_v49 = vmul.f32 1.442695, %v796_v42  ;;  %v2350_v24 = vld [vmem:[%s2595_s1 + $0x6c] ss:$16 sps:$4 sm:$0xff]   ;;  %v2356_v25 = vld [vmem:[%s2595_s1 + $0x60] ss:$16 sps:$4 sm:$0xff]  }
 0x3f4   :  { %1642 = vpow2.f32 %v787_v30  ;;  %v2368_v27 = vld [vmem:[%s2595_s1 + $0x44] ss:$16 sps:$4 sm:$0xff]   ;;  %v2380_v29 = vld [vmem:[%s2595_s1 + $0x40] ss:$16 sps:$4 sm:$0xff]   ;;  %v2386_v30 = vld [vmem:[%s2595_s1 + $0x48] ss:$16 sps:$4 sm:$0xff]  }
 0x3f5   :  { %1644 = vpow2.f32 %v797_v41  ;;  %v2392_v31 = vld [vmem:[%s2595_s1 + $0x24] ss:$16 sps:$4 sm:$0xff]   ;;  %v2398_v32 = vld [vmem:[%s2595_s1 + $0x2c] ss:$16 sps:$4 sm:$0xff]   ;;  %v2404_v51 = vld [vmem:[%s2595_s1 + $0x20] ss:$16 sps:$4 sm:$0xff]  }
 0x3f6   :  { %v2416_v41 = vld [vmem:[%s2595_s1 + $0x4] ss:$16 sps:$4 sm:$0xff]   ;;  %v2422_v42 = vld [vmem:[%s2595_s1 + $0xc] ss:$16 sps:$4 sm:$0xff]  }
 0x3f7   :  { %v2440_v45 = vld [vmem:[%s2595_s1 + $0xe4] ss:$16 sps:$4 sm:$0xff]  }
 0x3fb   :  { %v1637_v38 = vpop.eup %1636 }
 0x3fc   :  { %v779_v36 = vadd.f32 1.0, %v1637_v38  ;;  %v2428_v38 = vld [vmem:[%s2595_s1] ss:$16 sps:$4 sm:$0xff]  }
 0x3fd   :  { %v1639_v43 = vpop.eup %1638 }
 0x3fe   :  { %v789_v47 = vadd.f32 1.0, %v1639_v43  ;;  %1646 = vrcp.f32 %v779_v36  ;;  %v2434_v36 = vld [vmem:[%s2595_s1 + $0x8] ss:$16 sps:$4 sm:$0xff]   ;;  %v2446_v43 = vld [vmem:[%s2595_s1 + $0xec] ss:$16 sps:$4 sm:$0xff]  }
 0x3ff   :  { %v1641_v50 = vpop.eup %1640 }
 0x400   :  { %1648 = vrcp.f32 %v789_v47  ;;  %v780_v60 = vadd.f32 1.0, %v1641_v50 }
 0x401   :  { %1650 = vtanh.f32 %v767_v46  ;;  %v1643_v53 = vpop.eup %1642  ;;  %v1474_v46 = vld [vmem:[%s2596_s0 + $0x80] sm:$0xff] }
 0x402   :  { %1652 = vpow2.f32 %v799_v49  ;;  %v790_v55 = vadd.f32 1.0, %v1643_v53  ;;  %v1645_v56 = vpop.eup %1644  ;;  %v820_v47 = vunpack.c.l.bf16 %v1474_v46  ;;  %v1476_v49 = vld [vmem:[%s2596_s0 + $0x90] sm:$0xff]  ;;  %v821_v50 = vunpack.c.h.bf16 %v1474_v46 }
 0x403   :  { %1654 = vrcp.f32 %v780_v60  ;;  %v801_v33 = vadd.f32 1.0, %v1645_v56 }
 0x404   :  { %1656 = vtanh.f32 %v771_v52 }
 0x405   :  { %1658 = vrcp.f32 %v790_v55  ;;  %v824_v55 = vunpack.c.l.bf16 %v1476_v49 }
 0x406   :  { %1660 = vrcp.f32 %v801_v33 }
 0x40b   :  { %v1647_v35 = vpop.eup %1646 }
 0x40d   :  { %v1649_v62 = vpop.eup %1648 }
 0x40e   :  { %v1651_v58 = vpop.eup %1650  ;;  %v805_v59 = vmul.f32 %v1649_v62, %v2194_v57 }
 0x40f   :  { %v1653_v54 = vpop.eup %1652  ;;  %v807_v44 = vmul.f32 %v1651_v58, %v1647_v35 }
 0x410   :  { %v1655_v61 = vpop.eup %1654  ;;  %v802_v39 = vadd.f32 1.0, %v1653_v54  ;;  %v825_v54 = vunpack.c.h.bf16 %v1476_v49 }
 0x411   :  { %v1657_v34 = vpop.eup %1656  ;;  %v2248_v37 = vadd.f32 %v807_v44, %v805_v59 }
 0x412   :  { %v1659_v48 = vpop.eup %1658  ;;  %v808_v2 = vmul.f32 %v1657_v34, %v1655_v61  ;;  %v1475_v34 = vld [vmem:[%s2596_s0 + $0x88] sm:$0xff] }
 0x413   :  { %v806_v3 = vmul.f32 %v1659_v48, %v2197_v63  ;;  %1662 = vtanh.f32 %v2248_v37  ;;  %v1661_v57 = vpop.eup %1660  ;;  %v2258_v63 = vld [vmem:[%s2595_s1 + $0xe0] ss:$16 sps:$4 sm:$0xff]  }
 0x414   :  { %1664 = vrcp.f32 %v802_v39 }
 0x415   :  { %v2251_v4 = vadd.f32 %v808_v2, %v806_v3  ;;  %v823_v2 = vunpack.c.h.bf16 %v1475_v34 }
 0x417   :  { %1666 = vtanh.f32 %v2251_v4 }
 0x420   :  { %v1663_v5 = vpop.eup %1662 }
 0x421   :  { %v1665_v7 = vpop.eup %1664  ;;  %v813_v9 = vmul.f32 %v1663_v5, %v1661_v57 }
 0x424   :  { %v1667_v8 = vpop.eup %1666 }
 0x425   :  { %v814_v10 = vmul.f32 %v1667_v8, %v1665_v7  ;;  %v1477_v8 = vld [vmem:[%s2596_s0 + $0x98] sm:$0xff] }
 0x427   :  { %v828_v11 = vpack.c.bf16 %v814_v10, %v813_v9 }
 0x429   :  { %862 = vmatmul.mubr.bf16.vlgmr.msra.gmra.mxu0 %v828_v11  ;;  %905 = vmatmul.mubr.bf16.vlgmr.msra.gmra.mxu1 %v828_v11  ;;  %v827_v11 = vunpack.c.h.bf16 %v1477_v8 }
 0x42a   :  { %980 = vmatpush1.bf16.msra.mxu0 %v2258_v63  ;;  %1023 = vmatpush1.bf16.msra.mxu1 %v2264_v12 }
 0x42b   :  { %981 = vmatprep.subr.bf16.mxu0 %v2270_v13  ;;  %1024 = vmatprep.subr.bf16.mxu1 %v2276_v0 }
 0x42c   :  { %1011 = vmatprep.mubr.bf16.mxu0 %v1828_v1  ;;  %1054 = vmatprep.mubr.bf16.mxu1 %v1828_v1 }
 0x42e   :  { %982 = vmatpush1.bf16.msra.mxu0 %v2284_v14  ;;  %1025 = vmatpush1.bf16.msra.mxu1 %v2290_v6 }
 0x42f   :  { %983 = vmatprep.subr.bf16.mxu0 %v2296_v15  ;;  %1026 = vmatprep.subr.bf16.mxu1 %v2302_v16 }
 0x432   :  { %984 = vmatpush1.bf16.msra.mxu0 %v2308_v17  ;;  %1027 = vmatpush1.bf16.msra.mxu1 %v2314_v18 }
 0x433   :  { %985 = vmatprep.subr.bf16.mxu0 %v2320_v19  ;;  %1028 = vmatprep.subr.bf16.mxu1 %v2326_v20 }
 0x436   :  { %986 = vmatpush1.bf16.msra.mxu0 %v2332_v21  ;;  %1029 = vmatpush1.bf16.msra.mxu1 %v2338_v22 }
 0x437   :  { %987 = vmatprep.subr.bf16.mxu0 %v2344_v23  ;;  %1030 = vmatprep.subr.bf16.mxu1 %v2350_v24 }
 0x43a   :  { %988 = vmatpush1.bf16.msra.mxu0 %v2356_v25  ;;  %1031 = vmatpush1.bf16.msra.mxu1 %v2362_v26 }
 0x43b   :  { %989 = vmatprep.subr.bf16.mxu0 %v2368_v27  ;;  %1032 = vmatprep.subr.bf16.mxu1 %v2374_v28 }
 0x43e   :  { %990 = vmatpush1.bf16.msra.mxu0 %v2380_v29  ;;  %1033 = vmatpush1.bf16.msra.mxu1 %v2386_v30 }
 0x43f   :  { %991 = vmatprep.subr.bf16.mxu0 %v2392_v31  ;;  %1034 = vmatprep.subr.bf16.mxu1 %v2398_v32 }
 0x442   :  { %992 = vmatpush1.bf16.msra.mxu0 %v2404_v51  ;;  %1035 = vmatpush1.bf16.msra.mxu1 %v2410_v40 }
 0x443   :  { %993 = vmatprep.subr.bf16.mxu0 %v2416_v41  ;;  %1036 = vmatprep.subr.bf16.mxu1 %v2422_v42 }
 0x446   :  { %994 = vmatpush1.bf16.msra.mxu0 %v2428_v38  ;;  %1037 = vmatpush1.bf16.msra.mxu1 %v2434_v36 }
 0x447   :  { %1129 = vmatprep.subr.bf16.mxu0 %v2440_v45  ;;  %1172 = vmatprep.subr.bf16.mxu1 %v2446_v43 }
 0x4e9   :  { %v863_v60 = vpop.f32.mrf.mxu0  ;;  %v906_v52 = vpop.f32.mrf.mxu1 }
 0x4ea   :  { %v915_v53 = vadd.f32 %v863_v60, %v820_v47  ;;  %v822_v60 = vunpack.c.l.bf16 %v1475_v34 }
 0x4eb   :  { %v865_v56 = vpop.f32.mrf.mxu0  ;;  %v908_v58 = vpop.f32.mrf.mxu1 }
 0x4ec   :  { %v923_v35 = vsub.f32 0.0, %v915_v53  ;;  %v916_v62 = vadd.f32 %v865_v56, %v821_v50  ;;  %v918_v10 = vadd.f32 %v908_v58, %v823_v2 }
 0x4ed   :  { %v867_v59 = vpop.f32.mrf.mxu0  ;;  %v910_v57 = vpop.f32.mrf.mxu1 }
 0x4ee   :  { %v925_v44 = vmul.f32 1.442695, %v923_v35  ;;  %v933_v61 = vsub.f32 0.0, %v916_v62  ;;  %v919_v33 = vadd.f32 %v867_v59, %v824_v55  ;;  %v945_v49 = vsub.f32 0.0, %v918_v10 }
 0x4ef   :  { %v869_v48 = vpop.f32.mrf.mxu0  ;;  %v912_v47 = vpop.f32.mrf.mxu1  ;;  %v826_v62 = vunpack.c.l.bf16 %v1477_v8 }
 0x4f0   :  { %1668 = vpow2.f32 %v925_v44  ;;  %v935_v39 = vmul.f32 1.442695, %v933_v61  ;;  %v924_v3 = vsub.f32 0.0, %v919_v33  ;;  %v920_v5 = vadd.f32 %v869_v48, %v825_v54 }
 0x4f1   :  { %v922_v50 = vadd.f32 %v912_v47, %v827_v11  ;;  %v947_v53 = vmul.f32 1.442695, %v945_v49  ;;  %v917_v54 = vadd.f32 %v906_v52, %v822_v60  ;;  %v921_v48 = vadd.f32 %v910_v57, %v826_v62 }
 0x4f2   :  { %1670 = vpow2.f32 %v935_v39  ;;  %v927_v7 = vmul.f32 1.442695, %v924_v3  ;;  %v934_v9 = vsub.f32 0.0, %v920_v5 }
 0x4f3   :  { %v946_v55 = vsub.f32 0.0, %v922_v50 }
 0x4f4   :  { %1672 = vpow2.f32 %v927_v7  ;;  %v937_v46 = vmul.f32 1.442695, %v934_v9 }
 0x4f5   :  { %v949_v61 = vmul.f32 1.442695, %v946_v55 }
 0x4f6   :  { %1674 = vpow2.f32 %v937_v46 }
 0x4f7   :  { %1676 = vpow2.f32 %v947_v53 }
 0x4fd   :  { %v1669_v56 = vpop.eup %1668 }
 0x4fe   :  { %v929_v35 = vadd.f32 1.0, %v1669_v56 }
 0x4ff   :  { %v1671_v59 = vpop.eup %1670 }
 0x500   :  { %v939_v44 = vadd.f32 1.0, %v1671_v59  ;;  %1678 = vrcp.f32 %v929_v35 }
 0x501   :  { %v1673_v33 = vpop.eup %1672 }
 0x502   :  { %1680 = vrcp.f32 %v939_v44  ;;  %v930_v58 = vadd.f32 1.0, %v1673_v33 }
 0x503   :  { %1682 = vtanh.f32 %v917_v54  ;;  %v1675_v39 = vpop.eup %1674 }
 0x504   :  { %1684 = vpow2.f32 %v949_v61  ;;  %v940_v34 = vadd.f32 1.0, %v1675_v39  ;;  %v1677_v2 = vpop.eup %1676  ;;  %v1480_v61 = vld [vmem:[%s2596_s0 + $0xb0] sm:$0xff] }
 0x505   :  { %1686 = vrcp.f32 %v930_v58  ;;  %v951_v11 = vadd.f32 1.0, %v1677_v2 }
 0x506   :  { %1688 = vtanh.f32 %v921_v48 }
 0x507   :  { %1690 = vrcp.f32 %v940_v34  ;;  %v974_v34 = vunpack.c.l.bf16 %v1480_v61 }
 0x508   :  { %1692 = vrcp.f32 %v951_v11 }
 0x50d   :  { %v1679_v3 = vpop.eup %1678 }
 0x50f   :  { %v1681_v5 = vpop.eup %1680 }
 0x510   :  { %v1683_v7 = vpop.eup %1682  ;;  %v955_v52 = vmul.f32 %v1681_v5, %v2248_v37 }
 0x511   :  { %v1685_v8 = vpop.eup %1684  ;;  %v957_v9 = vmul.f32 %v1683_v7, %v1679_v3 }
 0x512   :  { %v1687_v10 = vpop.eup %1686  ;;  %v952_v49 = vadd.f32 1.0, %v1685_v8 }
 0x513   :  { %v1689_v46 = vpop.eup %1688  ;;  %v2462_v47 = vadd.f32 %v957_v9, %v955_v52 }
 0x514   :  { %v1691_v57 = vpop.eup %1690  ;;  %v958_v50 = vmul.f32 %v1689_v46, %v1687_v10  ;;  %v1479_v10 = vld [vmem:[%s2596_s0 + $0xa8] sm:$0xff] }
 0x515   :  { %v956_v60 = vmul.f32 %v1691_v57, %v2251_v4  ;;  %1694 = vtanh.f32 %v2462_v47  ;;  %v1693_v37 = vpop.eup %1692  ;;  %v1478_v4 = vld [vmem:[%s2596_s0 + $0xa0] sm:$0xff]  ;;  %v973_v57 = vunpack.c.h.bf16 %v1479_v10 }
 0x516   :  { %1696 = vrcp.f32 %v952_v49  ;;  %v970_v44 = vunpack.c.l.bf16 %v1478_v4  ;;  %v971_v33 = vunpack.c.h.bf16 %v1478_v4 }
 0x517   :  { %v2465_v53 = vadd.f32 %v958_v50, %v956_v60 }
 0x519   :  { %1698 = vtanh.f32 %v2465_v53 }
 0x522   :  { %v1695_v55 = vpop.eup %1694 }
 0x523   :  { %v1697_v56 = vpop.eup %1696  ;;  %v963_v62 = vmul.f32 %v1695_v55, %v1693_v37  ;;  %v1481_v55 = vld [vmem:[%s2596_s0 + $0xb8] sm:$0xff] }
 0x526   :  { %v1699_v35 = vpop.eup %1698 }
 0x527   :  { %v964_v59 = vmul.f32 %v1699_v35, %v1697_v56 }
 0x529   :  { %v978_v54 = vpack.c.bf16 %v964_v59, %v963_v62  ;;  %v977_v62 = vunpack.c.h.bf16 %v1481_v55 }
 0x52b   :  { %1012 = vmatmul.mubr.bf16.vlgmr.msra.gmra.mxu0 %v978_v54  ;;  %1055 = vmatmul.mubr.bf16.vlgmr.msra.gmra.mxu1 %v978_v54 }
 0x52c   :  { %1130 = vmatpush1.bf16.msra.mxu0 %v2258_v63  ;;  %1173 = vmatpush1.bf16.msra.mxu1 %v2264_v12 }
 0x52d   :  { %1131 = vmatprep.subr.bf16.mxu0 %v2270_v13  ;;  %1174 = vmatprep.subr.bf16.mxu1 %v2276_v0 }
 0x52e   :  { %1161 = vmatprep.mubr.bf16.mxu0 %v1828_v1  ;;  %1204 = vmatprep.mubr.bf16.mxu1 %v1828_v1 }
 0x530   :  { %1132 = vmatpush1.bf16.msra.mxu0 %v2284_v14  ;;  %1175 = vmatpush1.bf16.msra.mxu1 %v2290_v6 }
 0x531   :  { %1133 = vmatprep.subr.bf16.mxu0 %v2296_v15  ;;  %1176 = vmatprep.subr.bf16.mxu1 %v2302_v16 }
 0x534   :  { %1134 = vmatpush1.bf16.msra.mxu0 %v2308_v17  ;;  %1177 = vmatpush1.bf16.msra.mxu1 %v2314_v18 }
 0x535   :  { %1135 = vmatprep.subr.bf16.mxu0 %v2320_v19  ;;  %1178 = vmatprep.subr.bf16.mxu1 %v2326_v20 }
 0x538   :  { %1136 = vmatpush1.bf16.msra.mxu0 %v2332_v21  ;;  %1179 = vmatpush1.bf16.msra.mxu1 %v2338_v22 }
 0x539   :  { %1137 = vmatprep.subr.bf16.mxu0 %v2344_v23  ;;  %1180 = vmatprep.subr.bf16.mxu1 %v2350_v24 }
 0x53c   :  { %1138 = vmatpush1.bf16.msra.mxu0 %v2356_v25  ;;  %1181 = vmatpush1.bf16.msra.mxu1 %v2362_v26 }
 0x53d   :  { %1139 = vmatprep.subr.bf16.mxu0 %v2368_v27  ;;  %1182 = vmatprep.subr.bf16.mxu1 %v2374_v28 }
 0x540   :  { %1140 = vmatpush1.bf16.msra.mxu0 %v2380_v29  ;;  %1183 = vmatpush1.bf16.msra.mxu1 %v2386_v30 }
 0x541   :  { %1141 = vmatprep.subr.bf16.mxu0 %v2392_v31  ;;  %1184 = vmatprep.subr.bf16.mxu1 %v2398_v32 }
 0x544   :  { %1142 = vmatpush1.bf16.msra.mxu0 %v2404_v51  ;;  %1185 = vmatpush1.bf16.msra.mxu1 %v2410_v40 }
 0x545   :  { %1143 = vmatprep.subr.bf16.mxu0 %v2416_v41  ;;  %1186 = vmatprep.subr.bf16.mxu1 %v2422_v42 }
 0x548   :  { %1144 = vmatpush1.bf16.msra.mxu0 %v2428_v38  ;;  %1187 = vmatpush1.bf16.msra.mxu1 %v2434_v36 }
 0x549   :  { %1279 = vmatprep.subr.bf16.mxu0 %v2440_v45  ;;  %1322 = vmatprep.subr.bf16.mxu1 %v2446_v43  ;;  %v975_v43 = vunpack.c.h.bf16 %v1480_v61  ;;  %v972_v61 = vunpack.c.l.bf16 %v1479_v10 }
 0x5eb   :  { %v1013_v58 = vpop.f32.mrf.mxu0  ;;  %v1056_v48 = vpop.f32.mrf.mxu1 }
 0x5ec   :  { %v1065_v39 = vadd.f32 %v1013_v58, %v970_v44 }
 0x5ed   :  { %v1015_v2 = vpop.f32.mrf.mxu0  ;;  %v1058_v45 = vpop.f32.mrf.mxu1 }
 0x5ee   :  { %v1073_v3 = vsub.f32 0.0, %v1065_v39  ;;  %v1066_v5 = vadd.f32 %v1015_v2, %v971_v33  ;;  %v1068_v35 = vadd.f32 %v1058_v45, %v973_v57  ;;  %v976_v2 = vunpack.c.l.bf16 %v1481_v55 }
 0x5ef   :  { %v1017_v7 = vpop.f32.mrf.mxu0  ;;  %v1060_v50 = vpop.f32.mrf.mxu1 }
 0x5f0   :  { %v1075_v52 = vmul.f32 1.442695, %v1073_v3  ;;  %v1083_v8 = vsub.f32 0.0, %v1066_v5  ;;  %v1069_v9 = vadd.f32 %v1017_v7, %v974_v34  ;;  %v1095_v4 = vsub.f32 0.0, %v1068_v35 }
 0x5f1   :  { %v1019_v11 = vpop.f32.mrf.mxu0  ;;  %v1062_v54 = vpop.f32.mrf.mxu1  ;;  %v1067_v5 = vadd.f32 %v1056_v48, %v972_v61 }
 0x5f2   :  { %1700 = vpow2.f32 %v1075_v52  ;;  %v1085_v46 = vmul.f32 1.442695, %v1083_v8  ;;  %v1074_v49 = vsub.f32 0.0, %v1069_v9  ;;  %v1070_v60 = vadd.f32 %v1019_v11, %v975_v43 }
 0x5f3   :  { %v1072_v44 = vadd.f32 %v1062_v54, %v977_v62  ;;  %v1097_v33 = vmul.f32 1.442695, %v1095_v4  ;;  %v1071_v8 = vadd.f32 %v1060_v50, %v976_v2 }
 0x5f4   :  { %1702 = vpow2.f32 %v1085_v46  ;;  %v1077_v37 = vmul.f32 1.442695, %v1074_v49  ;;  %v1084_v56 = vsub.f32 0.0, %v1070_v60 }
 0x5f5   :  { %v1096_v58 = vsub.f32 0.0, %v1072_v44 }
 0x5f6   :  { %1704 = vpow2.f32 %v1077_v37  ;;  %v1087_v59 = vmul.f32 1.442695, %v1084_v56 }
 0x5f7   :  { %v1099_v43 = vmul.f32 1.442695, %v1096_v58 }
 0x5f8   :  { %1706 = vpow2.f32 %v1087_v59 }
 0x5f9   :  { %1708 = vpow2.f32 %v1097_v33 }
 0x5ff   :  { %v1701_v39 = vpop.eup %1700 }
 0x600   :  { %v1079_v34 = vadd.f32 1.0, %v1701_v39 }
 0x601   :  { %v1703_v3 = vpop.eup %1702 }
 0x602   :  { %v1089_v7 = vadd.f32 1.0, %v1703_v3  ;;  %1710 = vrcp.f32 %v1079_v34 }
 0x603   :  { %v1705_v52 = vpop.eup %1704 }
 0x604   :  { %1712 = vrcp.f32 %v1089_v7  ;;  %v1080_v45 = vadd.f32 1.0, %v1705_v52 }
 0x605   :  { %1714 = vtanh.f32 %v1067_v5  ;;  %v1707_v9 = vpop.eup %1706 }
 0x606   :  { %1716 = vpow2.f32 %v1099_v43  ;;  %v1090_v10 = vadd.f32 1.0, %v1707_v9  ;;  %v1709_v11 = vpop.eup %1708 }
 0x607   :  { %1718 = vrcp.f32 %v1080_v45  ;;  %v1101_v56 = vadd.f32 1.0, %v1709_v11 }
 0x608   :  { %1720 = vtanh.f32 %v1071_v8 }
 0x609   :  { %1722 = vrcp.f32 %v1090_v10 }
 0x60a   :  { %1724 = vrcp.f32 %v1101_v56 }
 0x60f   :  { %v1711_v46 = vpop.eup %1710 }
 0x611   :  { %v1713_v57 = vpop.eup %1712 }
 0x612   :  { %v1715_v49 = vpop.eup %1714  ;;  %v1105_v48 = vmul.f32 %v1713_v57, %v2462_v47 }
 0x613   :  { %v1717_v60 = vpop.eup %1716  ;;  %v1107_v37 = vmul.f32 %v1715_v49, %v1711_v46 }
 0x614   :  { %v1719_v55 = vpop.eup %1718  ;;  %v1102_v59 = vadd.f32 1.0, %v1717_v60 }
 0x615   :  { %v1721_v35 = vpop.eup %1720  ;;  %v2516_v62 = vadd.f32 %v1107_v37, %v1105_v48 }
 0x616   :  { %v1723_v50 = vpop.eup %1722  ;;  %v1108_v54 = vmul.f32 %v1721_v35, %v1719_v55 }
 0x617   :  { %v1106_v4 = vmul.f32 %v1723_v50, %v2465_v53  ;;  %1726 = vtanh.f32 %v2516_v62  ;;  %v1725_v47 = vpop.eup %1724 }
 0x618   :  { %1728 = vrcp.f32 %v1102_v59 }
 0x619   :  { %v2519_v44 = vadd.f32 %v1108_v54, %v1106_v4 }
 0x61b   :  { %1730 = vtanh.f32 %v2519_v44 }
 0x624   :  { %v1727_v61 = vpop.eup %1726 }
 0x625   :  { %v1729_v33 = vpop.eup %1728  ;;  %v1113_v39 = vmul.f32 %v1727_v61, %v1725_v47 }
 0x628   :  { %v1731_v58 = vpop.eup %1730 }
 0x629   :  { %v1114_v34 = vmul.f32 %v1731_v58, %v1729_v33 }
 0x62b   :  { %v1128_v2 = vpack.c.bf16 %v1114_v34, %v1113_v39 }
 0x62d   :  { %1162 = vmatmul.mubr.bf16.vlgmr.msra.gmra.mxu0 %v1128_v2  ;;  %1205 = vmatmul.mubr.bf16.vlgmr.msra.gmra.mxu1 %v1128_v2 }
 0x62e   :  { %1280 = vmatpush1.bf16.msra.mxu0 %v2258_v63  ;;  %1323 = vmatpush1.bf16.msra.mxu1 %v2264_v12  ;;  %v1484_v12 = vld [vmem:[%s2596_s0 + $0xd0] sm:$0xff] }
 0x62f   :  { %1281 = vmatprep.subr.bf16.mxu0 %v2270_v13  ;;  %1324 = vmatprep.subr.bf16.mxu1 %v2276_v0 }
 0x630   :  { %1311 = vmatprep.mubr.bf16.mxu0 %v1828_v1  ;;  %1354 = vmatprep.mubr.bf16.mxu1 %v1828_v1  ;;  %v1482_v1 = vld [vmem:[%s2596_s0 + $0xc0] sm:$0xff] }
 0x631   :  { %v1120_v63 = vunpack.c.l.bf16 %v1482_v1  ;;  %v1121_v13 = vunpack.c.h.bf16 %v1482_v1 }
 0x632   :  { %1282 = vmatpush1.bf16.msra.mxu0 %v2284_v14  ;;  %1325 = vmatpush1.bf16.msra.mxu1 %v2290_v6 }
 0x633   :  { %1283 = vmatprep.subr.bf16.mxu0 %v2296_v15  ;;  %1326 = vmatprep.subr.bf16.mxu1 %v2302_v16  ;;  %v1124_v15 = vunpack.c.l.bf16 %v1484_v12 }
 0x636   :  { %1284 = vmatpush1.bf16.msra.mxu0 %v2308_v17  ;;  %1327 = vmatpush1.bf16.msra.mxu1 %v2314_v18 }
 0x637   :  { %1285 = vmatprep.subr.bf16.mxu0 %v2320_v19  ;;  %1328 = vmatprep.subr.bf16.mxu1 %v2326_v20 }
 0x63a   :  { %1286 = vmatpush1.bf16.msra.mxu0 %v2332_v21  ;;  %1329 = vmatpush1.bf16.msra.mxu1 %v2338_v22  ;;  %v1125_v21 = vunpack.c.h.bf16 %v1484_v12 }
 0x63b   :  { %1287 = vmatprep.subr.bf16.mxu0 %v2344_v23  ;;  %1330 = vmatprep.subr.bf16.mxu1 %v2350_v24 }
 0x63e   :  { %1288 = vmatpush1.bf16.msra.mxu0 %v2356_v25  ;;  %1331 = vmatpush1.bf16.msra.mxu1 %v2362_v26  ;;  %v1483_v25 = vld [vmem:[%s2596_s0 + $0xc8] sm:$0xff] }
 0x63f   :  { %1289 = vmatprep.subr.bf16.mxu0 %v2368_v27  ;;  %1332 = vmatprep.subr.bf16.mxu1 %v2374_v28  ;;  %v1123_v28 = vunpack.c.h.bf16 %v1483_v25  ;;  %v1122_v5 = vunpack.c.l.bf16 %v1483_v25 }
 0x642   :  { %1290 = vmatpush1.bf16.msra.mxu0 %v2380_v29  ;;  %1333 = vmatpush1.bf16.msra.mxu1 %v2386_v30 }
 0x643   :  { %1291 = vmatprep.subr.bf16.mxu0 %v2392_v31  ;;  %1334 = vmatprep.subr.bf16.mxu1 %v2398_v32 }
 0x646   :  { %1292 = vmatpush1.bf16.msra.mxu0 %v2404_v51  ;;  %1335 = vmatpush1.bf16.msra.mxu1 %v2410_v40  ;;  %v1485_v51 = vld [vmem:[%s2596_s0 + $0xd8] sm:$0xff] }
 0x647   :  { %1293 = vmatprep.subr.bf16.mxu0 %v2416_v41  ;;  %1336 = vmatprep.subr.bf16.mxu1 %v2422_v42  ;;  %v1127_v42 = vunpack.c.h.bf16 %v1485_v51  ;;  %v1126_v8 = vunpack.c.l.bf16 %v1485_v51 }
 0x64a   :  { %1294 = vmatpush1.bf16.msra.mxu0 %v2428_v38  ;;  %1337 = vmatpush1.bf16.msra.mxu1 %v2434_v36 }
 0x6ed   :  { %v1163_v0 = vpop.f32.mrf.mxu0  ;;  %v1206_v14 = vpop.f32.mrf.mxu1 }
 0x6ee   :  { %v1215_v6 = vadd.f32 %v1163_v0, %v1120_v63  ;;  %v1217_v10 = vadd.f32 %v1206_v14, %v1122_v5  ;;  %v1489_v5 = vld [vmem:[%s2596_s0 + $0xf8] sm:$0xff] }
 0x6ef   :  { %v1165_v16 = vpop.f32.mrf.mxu0  ;;  %v1208_v19 = vpop.f32.mrf.mxu1 }
 0x6f0   :  { %v1223_v17 = vsub.f32 0.0, %v1215_v6  ;;  %v1216_v18 = vadd.f32 %v1165_v16, %v1121_v13  ;;  %v1218_v41 = vadd.f32 %v1208_v19, %v1123_v28 }
 0x6f1   :  { %v1167_v20 = vpop.f32.mrf.mxu0  ;;  %v1210_v30 = vpop.f32.mrf.mxu1 }
 0x6f2   :  { %v1225_v22 = vmul.f32 1.442695, %v1223_v17  ;;  %v1233_v23 = vsub.f32 0.0, %v1216_v18  ;;  %v1219_v24 = vadd.f32 %v1167_v20, %v1124_v15  ;;  %v1245_v53 = vsub.f32 0.0, %v1218_v41  ;;  %v1488_v17 = vld [vmem:[%s2596_s0 + $0xf0] sm:$0xff] }
 0x6f3   :  { %v1169_v26 = vpop.f32.mrf.mxu0  ;;  %v1212_v36 = vpop.f32.mrf.mxu1  ;;  %v1221_v48 = vadd.f32 %v1210_v30, %v1126_v8  ;;  %v1275_v28 = vunpack.c.h.bf16 %v1488_v17  ;;  %v1487_v30 = vld [vmem:[%s2596_s0 + $0xe8] sm:$0xff] }
 0x6f4   :  { %1732 = vpow2.f32 %v1225_v22  ;;  %v1235_v27 = vmul.f32 1.442695, %v1233_v23  ;;  %v1224_v29 = vsub.f32 0.0, %v1219_v24  ;;  %v1220_v31 = vadd.f32 %v1169_v26, %v1125_v21 }
 0x6f5   :  { %v1222_v3 = vadd.f32 %v1212_v36, %v1127_v42  ;;  %v1247_v7 = vmul.f32 1.442695, %v1245_v53  ;;  %v1274_v22 = vunpack.c.l.bf16 %v1488_v17  ;;  %v1273_v51 = vunpack.c.h.bf16 %v1487_v30 }
 0x6f6   :  { %1734 = vpow2.f32 %v1235_v27  ;;  %v1227_v32 = vmul.f32 1.442695, %v1224_v29  ;;  %v1234_v40 = vsub.f32 0.0, %v1220_v31 }
 0x6f7   :  { %v1246_v43 = vsub.f32 0.0, %v1222_v3 }
 0x6f8   :  { %1736 = vpow2.f32 %v1227_v32  ;;  %v1237_v38 = vmul.f32 1.442695, %v1234_v40 }
 0x6f9   :  { %v1249_v46 = vmul.f32 1.442695, %v1246_v43  ;;  %v1277_v43 = vunpack.c.h.bf16 %v1489_v5 }
 0x6fa   :  { %1738 = vpow2.f32 %v1237_v38 }
 0x6fb   :  { %1740 = vpow2.f32 %v1247_v7 }
 0x701   :  { %v1733_v52 = vpop.eup %1732 }
 0x702   :  { %v1229_v45 = vadd.f32 1.0, %v1733_v52 }
 0x703   :  { %v1735_v9 = vpop.eup %1734 }
 0x704   :  { %v1239_v11 = vadd.f32 1.0, %v1735_v9  ;;  %1742 = vrcp.f32 %v1229_v45 }
 0x705   :  { %v1737_v57 = vpop.eup %1736 }
 0x706   :  { %1744 = vrcp.f32 %v1239_v11  ;;  %v1230_v49 = vadd.f32 1.0, %v1737_v57 }
 0x707   :  { %1746 = vtanh.f32 %v1217_v10  ;;  %v1739_v60 = vpop.eup %1738  ;;  %v1272_v10 = vunpack.c.l.bf16 %v1487_v30 }
 0x708   :  { %1748 = vpow2.f32 %v1249_v46  ;;  %v1240_v37 = vadd.f32 1.0, %v1739_v60  ;;  %v1741_v55 = vpop.eup %1740  ;;  %v1276_v60 = vunpack.c.l.bf16 %v1489_v5 }
 0x709   :  { %1750 = vrcp.f32 %v1230_v49  ;;  %v1251_v61 = vadd.f32 1.0, %v1741_v55 }
 0x70a   :  { %1752 = vtanh.f32 %v1221_v48 }
 0x70b   :  { %1754 = vrcp.f32 %v1240_v37 }
 0x70c   :  { %1756 = vrcp.f32 %v1251_v61 }
 0x711   :  { %v1743_v56 = vpop.eup %1742 }
 0x713   :  { %v1745_v35 = vpop.eup %1744 }
 0x714   :  { %v1747_v50 = vpop.eup %1746  ;;  %v1255_v59 = vmul.f32 %v1745_v35, %v2516_v62 }
 0x715   :  { %v1749_v54 = vpop.eup %1748  ;;  %v1257_v4 = vmul.f32 %v1747_v50, %v1743_v56 }
 0x716   :  { %v1751_v47 = vpop.eup %1750  ;;  %v1252_v34 = vadd.f32 1.0, %v1749_v54 }
 0x717   :  { %v1753_v33 = vpop.eup %1752  ;;  %v2568_v58 = vadd.f32 %v1257_v4, %v1255_v59 }
 0x718   :  { %v1755_v39 = vpop.eup %1754  ;;  %v1258_v2 = vmul.f32 %v1753_v33, %v1751_v47 }
 0x719   :  { %v1256_v1 = vmul.f32 %v1755_v39, %v2519_v44  ;;  %1758 = vtanh.f32 %v2568_v58  ;;  %v1757_v62 = vpop.eup %1756  ;;  %v1486_v44 = vld [vmem:[%s2596_s0 + $0xe0] sm:$0xff] }
 0x71a   :  { %1760 = vrcp.f32 %v1252_v34  ;;  %v1270_v16 = vunpack.c.l.bf16 %v1486_v44  ;;  %v1271_v18 = vunpack.c.h.bf16 %v1486_v44 }
 0x71b   :  { %v2571_v63 = vadd.f32 %v1258_v2, %v1256_v1 }
 0x71d   :  { %1762 = vtanh.f32 %v2571_v63 }
 0x726   :  { %v1759_v12 = vpop.eup %1758 }
 0x727   :  { %v1761_v13 = vpop.eup %1760  ;;  %v1263_v14 = vmul.f32 %v1759_v12, %v1757_v62 }
 0x72a   :  { %v1763_v0 = vpop.eup %1762 }
 0x72b   :  { %v1264_v6 = vmul.f32 %v1763_v0, %v1761_v13 }
 0x72d   :  { %v1278_v15 = vpack.c.bf16 %v1264_v6, %v1263_v14 }
 0x72f   :  { %1312 = vmatmul.mubr.bf16.vlgmr.msra.gmra.mxu0 %v1278_v15  ;;  %1355 = vmatmul.mubr.bf16.vlgmr.msra.gmra.mxu1 %v1278_v15 }
 0x7ef   :  { %v1313_v19 = vpop.f32.mrf.mxu0  ;;  %v1356_v20 = vpop.f32.mrf.mxu1 }
 0x7f0   :  { %v1365_v21 = vadd.f32 %v1313_v19, %v1270_v16  ;;  %v1367_v49 = vadd.f32 %v1356_v20, %v1272_v10 }
 0x7f1   :  { %v1315_v23 = vpop.f32.mrf.mxu0  ;;  %v1358_v26 = vpop.f32.mrf.mxu1 }
 0x7f2   :  { %v1373_v24 = vsub.f32 0.0, %v1365_v21  ;;  %v1366_v25 = vadd.f32 %v1315_v23, %v1271_v18  ;;  %v1368_v3 = vadd.f32 %v1358_v26, %v1273_v51 }
 0x7f3   :  { %v1317_v27 = vpop.f32.mrf.mxu0  ;;  %v1360_v38 = vpop.f32.mrf.mxu1 }
 0x7f4   :  { %v1375_v29 = vmul.f32 1.442695, %v1373_v24  ;;  %v1383_v31 = vsub.f32 0.0, %v1366_v25  ;;  %v1369_v32 = vadd.f32 %v1317_v27, %v1274_v22  ;;  %v1395_v8 = vsub.f32 0.0, %v1368_v3 }
 0x7f5   :  { %v1319_v40 = vpop.f32.mrf.mxu0  ;;  %v1362_v45 = vpop.f32.mrf.mxu1  ;;  %v1371_v59 = vadd.f32 %v1360_v38, %v1276_v60 }
 0x7f6   :  { %1764 = vpow2.f32 %v1375_v29  ;;  %v1385_v41 = vmul.f32 1.442695, %v1383_v31  ;;  %v1374_v42 = vsub.f32 0.0, %v1369_v32  ;;  %v1370_v36 = vadd.f32 %v1319_v40, %v1275_v28 }
 0x7f7   :  { %v1372_v9 = vadd.f32 %v1362_v45, %v1277_v43  ;;  %v1397_v11 = vmul.f32 1.442695, %v1395_v8 }
 0x7f8   :  { %1766 = vpow2.f32 %v1385_v41  ;;  %v1377_v53 = vmul.f32 1.442695, %v1374_v42  ;;  %v1384_v7 = vsub.f32 0.0, %v1370_v36 }
 0x7f9   :  { %v1396_v46 = vsub.f32 0.0, %v1372_v9 }
 0x7fa   :  { %1768 = vpow2.f32 %v1377_v53  ;;  %v1387_v52 = vmul.f32 1.442695, %v1384_v7 }
 0x7fb   :  { %v1399_v56 = vmul.f32 1.442695, %v1396_v46 }
 0x7fc   :  { %1770 = vpow2.f32 %v1387_v52 }
 0x7fd   :  { %1772 = vpow2.f32 %v1397_v11 }
 0x803   :  { %v1765_v57 = vpop.eup %1764 }
 0x804   :  { %v1379_v48 = vadd.f32 1.0, %v1765_v57 }
 0x805   :  { %v1767_v37 = vpop.eup %1766 }
 0x806   :  { %1774 = vrcp.f32 %v1379_v48  ;;  %v1389_v55 = vadd.f32 1.0, %v1767_v37 }
 0x807   :  { %v1769_v35 = vpop.eup %1768  ;;  %1776 = vtanh.f32 %v1367_v49 }
 0x808   :  { %1778 = vrcp.f32 %v1389_v55  ;;  %v1380_v50 = vadd.f32 1.0, %v1769_v35 }
 0x809   :  { %v1771_v54 = vpop.eup %1770  ;;  %1780 = vpow2.f32 %v1399_v56 }
 0x80a   :  { %1782 = vrcp.f32 %v1380_v50  ;;  %v1390_v4 = vadd.f32 1.0, %v1771_v54  ;;  %v1773_v47 = vpop.eup %1772 }
 0x80b   :  { %1784 = vtanh.f32 %v1371_v59  ;;  %v1401_v34 = vadd.f32 1.0, %v1773_v47 }
 0x80c   :  { %1786 = vrcp.f32 %v1390_v4 }
 0x80d   :  { %1788 = vrcp.f32 %v1401_v34 }
 0x813   :  { %v1775_v61 = vpop.eup %1774 }
 0x814   :  { %v1777_v33 = vpop.eup %1776 }
 0x815   :  { %v1779_v39 = vpop.eup %1778  ;;  %v1407_v2 = vmul.f32 %v1777_v33, %v1775_v61 }
 0x816   :  { %v1405_v1 = vmul.f32 %v1779_v39, %v2568_v58  ;;  %v1781_v62 = vpop.eup %1780 }
 0x817   :  { %v1783_v12 = vpop.eup %1782  ;;  %v1402_v6 = vadd.f32 1.0, %v1781_v62 }
 0x818   :  { %v1409_v13 = vadd.f32 %v1407_v2, %v1405_v1  ;;  %v1785_v0 = vpop.eup %1784 }
 0x819   :  { %v1787_v14 = vpop.eup %1786  ;;  %v1408_v15 = vmul.f32 %v1785_v0, %v1783_v12 }
 0x81a   :  { %1790 = vtanh.f32 %v1409_v13  ;;  %v1406_v44 = vmul.f32 %v1787_v14, %v2571_v63  ;;  %v1789_v17 = vpop.eup %1788 }
 0x81b   :  { %1792 = vrcp.f32 %v1402_v6 }
 0x81c   :  { %v1410_v16 = vadd.f32 %v1408_v15, %v1406_v44 }
 0x81e   :  { %1794 = vtanh.f32 %v1410_v16 }
 0x827   :  { %v1791_v18 = vpop.eup %1790 }
 0x828   :  { %v1413_v19 = vmul.f32 %v1791_v18, %v1789_v17  ;;  %v1793_v58 = vpop.eup %1792 }
 0x82a   :  { %1424 = vst [vmem:[%s2597_s2] sm:$0xff] %v1413_v19 }
 0x82b   :  { %v1795_v20 = vpop.eup %1794 }
 0x82c   :  { %v1414_v21 = vmul.f32 %v1795_v20, %v1793_v58 }
 0x82e   :  { %1425 = vst [vmem:[%s2597_s2 + $0x8] sm:$0xff] %v1414_v21 }

</bundles_post_ra>
